<compile_context>
chip_gen: v7x
topology: tpu7x:2x2x1
jax: 0.10.0
libtpu: 0.0.40
codegen_flags: <defaults>
</compile_context>

<pallas_src>
import functools

import jax
import jax.numpy as jnp
from jax.experimental import pallas as pl
from jax.experimental.pallas import tpu as pltpu

NUM_FEATURES = 10      # X.shape[1] for riceClassification.csv (10 feature cols)
HIDDEN_NEURONS = 10


def _fused_linear_sigmoid_kernel(x_ref, w_ref, b_ref, out_ref):
    # x_ref  : (tile_b, F)  f32, natural batch-major slab (features on lanes)
    # w_ref  : (1, F)       f32, collapsed weight row, VMEM-resident across grid
    # b_ref  : (1, 1)       f32, collapsed bias scalar (SMEM)
    # out_ref: (tile_b, 1)  f32, sigmoid probabilities for this slab
    prods = x_ref[...] * w_ref[...]                              # VPU (broadcast)
    logits = jnp.sum(prods, axis=1, keepdims=True) + b_ref[0, 0]  # XLU lane reduce
    # Exact sigmoid; exp runs on the EUP, divide on the VPU - both fully hidden
    # under the HBM stream.
    out_ref[...] = (1.0 / (1.0 + jnp.exp(-logits))).astype(out_ref.dtype)


def mymodel_forward(x, w1, b1, w2, b2, *, tile_b=8192):
    """Forward pass of MyModel.

    Args:
      x:  (B, NUM_FEATURES) float32 in its natural row-major layout.
      w1: (NUM_FEATURES, HIDDEN_NEURONS)  -- already transposed PyTorch weight
      b1: (HIDDEN_NEURONS,)
      w2: (HIDDEN_NEURONS, 1)             -- already transposed PyTorch weight
      b2: (1,)
      tile_b: batch rows per grid step (multiple of 8 when B > tile_b).
    Returns:
      (B, 1) float32 sigmoid probabilities.
    """
    B, F = x.shape

    # Algebraically collapse the two linear layers (no nonlinearity between).
    hi = jax.lax.Precision.HIGHEST
    w_row = jnp.dot(w1, w2, precision=hi).reshape(1, F)            # (1, F)
    b_eff = (jnp.dot(b1, w2, precision=hi) + b2).reshape(1, 1)     # (1, 1)

    if B <= tile_b:
        tile_b = B           # one grid step; full-array block is always legal
    else:
        assert tile_b % 8 == 0, "tile_b must be a multiple of 8 (sublane tiling)"
    num_tiles = pl.cdiv(B, tile_b)
    # Any partial last block is handled by Pallas boundary masking: OOB input
    # rows read garbage that only feeds discarded lanes; OOB output writes are
    # dropped.  No jnp.pad copy needed.

    return pl.pallas_call(
        _fused_linear_sigmoid_kernel,
        out_shape=jax.ShapeDtypeStruct((B, 1), jnp.float32),
        grid=(num_tiles,),
        in_specs=[
            pl.BlockSpec((tile_b, F), lambda i: (i, 0)),           # x slab
            pl.BlockSpec((1, F), lambda i: (0, 0)),                # weights (resident)
            pl.BlockSpec(memory_space=pltpu.MemorySpace.SMEM),     # bias scalar
        ],
        out_specs=pl.BlockSpec((tile_b, 1), lambda i: (i, 0)),
        compiler_params=pltpu.CompilerParams(
            dimension_semantics=("parallel",),   # v7x megacore shards batch tiles
            vmem_limit_bytes=32 * 1024 * 1024,   # covers double-buffered lane-padded slabs on all gens
        ),
    )(x, w_row, b_eff)


if __name__ == "__main__":
    key = jax.random.PRNGKey(0)
    k_x, k_w1, k_b1, k_w2, k_b2 = jax.random.split(key, 5)

    batch = 1000   # not a multiple of the demo tile -> exercises masked tail
    x = jax.random.normal(k_x, (batch, NUM_FEATURES), dtype=jnp.float32)

    # Deterministic parameter init (uniform like torch's default Linear init).
    bound1 = 1.0 / (NUM_FEATURES ** 0.5)
    w1 = jax.random.uniform(k_w1, (NUM_FEATURES, HIDDEN_NEURONS),
                            minval=-bound1, maxval=bound1, dtype=jnp.float32)
    b1 = jax.random.uniform(k_b1, (HIDDEN_NEURONS,),
                            minval=-bound1, maxval=bound1, dtype=jnp.float32)
    bound2 = 1.0 / (HIDDEN_NEURONS ** 0.5)
    w2 = jax.random.uniform(k_w2, (HIDDEN_NEURONS, 1),
                            minval=-bound2, maxval=bound2, dtype=jnp.float32)
    b2 = jax.random.uniform(k_b2, (1,),
                            minval=-bound2, maxval=bound2, dtype=jnp.float32)

    # Reference in plain JAX (un-collapsed two-layer form, full precision).
    hi = jax.lax.Precision.HIGHEST
    ref = jax.nn.sigmoid(
        jnp.dot(jnp.dot(x, w1, precision=hi) + b1, w2, precision=hi) + b2)

    # Path 1: default tile covers the whole (small) batch -> grid=(1,).
    fwd_single = jax.jit(mymodel_forward)
    out1 = jax.block_until_ready(fwd_single(x, w1, b1, w2, b2))
    assert out1.shape == (batch, 1)
    assert jnp.allclose(out1, ref, atol=1e-5), "single-block mismatch vs reference"

    # Path 2: multi-tile grid with a masked partial last block (1000 = 3*256 + 232).
    fwd_tiled = jax.jit(functools.partial(mymodel_forward, tile_b=256))
    out2 = jax.block_until_ready(fwd_tiled(x, w1, b1, w2, b2))
    assert out2.shape == (batch, 1)
    assert jnp.allclose(out2, ref, atol=1e-5), "tiled mismatch vs reference"

    print("KERNEL_OK")
</pallas_src>

<mosaic_0001>
module attributes {stable_mosaic.version = 11 : i64} {
  func.func @_fused_linear_sigmoid_kernel(%arg0: i32, %arg1: memref<1000x10xf32, #tpu.memory_space<vmem>>, %arg2: memref<1x10xf32, #tpu.memory_space<vmem>>, %arg3: memref<1x1xf32, #tpu.memory_space<smem>>, %arg4: memref<1000x1xf32, #tpu.memory_space<vmem>>) attributes {dimension_semantics = [#tpu.dimension_semantics<parallel>], iteration_bounds = array<i64: 1>, scalar_prefetch = 0 : i64, scratch_operands = 0 : i64, tpu.core_type = #tpu.core_type<tc>, window_params = [{transform_indices = @transform_0, window_bounds = array<i64: 1000, 10>}, {pipeline_mode = #tpu.pipeline_mode<synchronous>, transform_indices = @transform_1, window_bounds = array<i64: 1, 10>}, {transform_indices = @transform_2, window_bounds = array<i64: 1, 1>}, {transform_indices = @transform_3, window_bounds = array<i64: 1000, 1>}]} {
    %c0 = arith.constant 0 : index
    %c0_0 = arith.constant 0 : index
    %0 = vector.load %arg1[%c0, %c0_0] : memref<1000x10xf32, #tpu.memory_space<vmem>>, vector<1000x10xf32>
    %c0_1 = arith.constant 0 : index
    %c0_2 = arith.constant 0 : index
    %1 = vector.load %arg2[%c0_1, %c0_2] : memref<1x10xf32, #tpu.memory_space<vmem>>, vector<1x10xf32>
    %2 = vector.broadcast %1 : vector<1x10xf32> to vector<1000x10xf32>
    %3 = arith.mulf %0, %2 : vector<1000x10xf32>
    %cst = arith.constant dense<0.000000e+00> : vector<1000xf32>
    %4 = vector.multi_reduction <add>, %3, %cst [1] : vector<1000x10xf32> to vector<1000xf32>
    %5 = vector.shape_cast %4 : vector<1000xf32> to vector<1000x1xf32>
    %c0_3 = arith.constant 0 : index
    %c0_4 = arith.constant 0 : index
    %6 = memref.load %arg3[%c0_3, %c0_4] : memref<1x1xf32, #tpu.memory_space<smem>>
    %7 = vector.broadcast %6 : f32 to vector<1000x1xf32>
    %8 = arith.addf %5, %7 : vector<1000x1xf32>
    %cst_5 = arith.constant 0.000000e+00 : f32
    %9 = vector.broadcast %cst_5 : f32 to vector<1000x1xf32>
    %10 = arith.subf %9, %8 : vector<1000x1xf32>
    %11 = math.exp %10 : vector<1000x1xf32>
    %cst_6 = arith.constant 1.000000e+00 : f32
    %12 = vector.broadcast %cst_6 : f32 to vector<1000x1xf32>
    %13 = arith.addf %12, %11 : vector<1000x1xf32>
    %cst_7 = arith.constant 1.000000e+00 : f32
    %14 = vector.broadcast %cst_7 : f32 to vector<1000x1xf32>
    %15 = arith.divf %14, %13 : vector<1000x1xf32>
    %c0_8 = arith.constant 0 : index
    %c0_9 = arith.constant 0 : index
    %16 = vector.load %arg4[%c0_8, %c0_9] : memref<1000x1xf32, #tpu.memory_space<vmem>>, vector<1000x1xf32>
    tpu.vector_store %arg4[%c0_8, %c0_9], %15 {strides = array<i32>} : memref<1000x1xf32, #tpu.memory_space<vmem>>, vector<1000x1xf32>,
    return
  }
  func.func @transform_0(%arg0: i32) -> (i32, i32) {
    %c0_i32 = arith.constant 0 : i32
    %c0_i32_0 = arith.constant 0 : i32
    return %arg0, %c0_i32 : i32, i32
  }
  func.func @transform_1(%arg0: i32) -> (i32, i32) {
    %c0_i32 = arith.constant 0 : i32
    %c0_i32_0 = arith.constant 0 : i32
    %c0_i32_1 = arith.constant 0 : i32
    return %c0_i32, %c0_i32_0 : i32, i32
  }
  func.func @transform_2(%arg0: i32) -> (i32, i32) {
    %c0_i32 = arith.constant 0 : i32
    %c0_i32_0 = arith.constant 0 : i32
    %c0_i32_1 = arith.constant 0 : i32
    return %c0_i32, %c0_i32_0 : i32, i32
  }
  func.func @transform_3(%arg0: i32) -> (i32, i32) {
    %c0_i32 = arith.constant 0 : i32
    %c0_i32_0 = arith.constant 0 : i32
    return %arg0, %c0_i32 : i32, i32
  }
}

</mosaic_0001>

<bundles_post_ra>
// kernel: mymodel_forward.1
= control target key start
LH: loop header
LB: loop body
LE: loop exit
PB: predicated region body
PF: predicated region fallthrough
CT: control target
= control target key end

     0   :  { %vm272_vm0 = vcmask 80896   ;;  %vm1525_vm1 = vcmask 7168   ;;  %s3442_s0 = inlined_call_operand.vmem [shape: f32[1000,10], index: 0, kind: input, shape index: {}]   ;;  %s3443_s1 = inlined_call_operand.vmem [shape: f32[1,10], index: 1, kind: input, shape index: {}]   ;;  %s3444_s2 = inlined_call_operand.<no memory space> [shape: f32[1,1], index: 2, kind: input, shape index: {}]   ;;  %s3445_s3 = inlined_call_operand.vmem [shape: f32[1000,1], index: 3, kind: output, shape index: {}]  }
   0x1   :  { %v15_v0 = vld [vmem:[%s3442_s0] sm:$0xff]  ;;  %v17_v2 = vld [vmem:[%s3442_s0 + $0x10] sm:$0xff]  ;;  %v16_v5 = vld [vmem:[%s3442_s0 + $0x8] sm:$0xff] }
   0x2   :  { %v2183_v1 = vld [vmem:[%s3443_s1] ss:$0 sm:$0xff]  ;;  %v18_v6 = vld [vmem:[%s3442_s0 + $0x18] sm:$0xff]  ;;  %v20_v10 = vld [vmem:[%s3442_s0 + $0x28] sm:$0xff] }
   0x3   :  { %v147_v3 = vmul.f32 %v2183_v1, %v15_v0  ;;  %v149_v4 = vmul.f32 %v2183_v1, %v17_v2  ;;  %v148_v7 = vmul.f32 %v2183_v1, %v16_v5  ;;  %v150_v8 = vmul.f32 %v2183_v1, %v18_v6  ;;  %v19_v9 = vld [vmem:[%s3442_s0 + $0x20] sm:$0xff]  ;;  %v21_v17 = vld [vmem:[%s3442_s0 + $0x30] sm:$0xff]  ;;  %v22_v18 = vld [vmem:[%s3442_s0 + $0x38] sm:$0xff] }
   0x4   :  { %v151_v15 = vmul.f32 %v2183_v1, %v19_v9  ;;  %v152_v16 = vmul.f32 %v2183_v1, %v20_v10  ;;  %v153_v21 = vmul.f32 %v2183_v1, %v21_v17  ;;  %v154_v22 = vmul.f32 %v2183_v1, %v22_v18  ;;  %v23_v23 = vld [vmem:[%s3442_s0 + $0x40] sm:$0xff]  ;;  %v24_v24 = vld [vmem:[%s3442_s0 + $0x48] sm:$0xff]  ;;  %v25_v29 = vld [vmem:[%s3442_s0 + $0x50] sm:$0xff] }
   0x5   :  { %v273_v11 = vsel %vm272_vm0, %v147_v3, 0.0  ;;  %v279_v12 = vsel %vm272_vm0, %v149_v4, 0.0  ;;  %v276_v13 = vsel %vm272_vm0, %v148_v7, 0.0  ;;  %v282_v14 = vsel %vm272_vm0, %v150_v8, 0.0  ;;  %v26_v30 = vld [vmem:[%s3442_s0 + $0x58] sm:$0xff]  ;;  %v27_v35 = vld [vmem:[%s3442_s0 + $0x60] sm:$0xff] }
   0x6   :  { %274 = vadd.xlane.f32.xlu0 %v273_v11  ;;  %280 = vadd.xlane.f32.xlu1 %v279_v12  ;;  %v285_v19 = vsel %vm272_vm0, %v151_v15, 0.0  ;;  %v288_v20 = vsel %vm272_vm0, %v152_v16, 0.0  ;;  %v291_v25 = vsel %vm272_vm0, %v153_v21, 0.0  ;;  %v294_v26 = vsel %vm272_vm0, %v154_v22, 0.0  ;;  %v28_v36 = vld [vmem:[%s3442_s0 + $0x68] sm:$0xff]  ;;  %v29_v41 = vld [vmem:[%s3442_s0 + $0x70] sm:$0xff] }
   0x7   :  { %v155_v27 = vmul.f32 %v2183_v1, %v23_v23  ;;  %v156_v28 = vmul.f32 %v2183_v1, %v24_v24  ;;  %v157_v33 = vmul.f32 %v2183_v1, %v25_v29  ;;  %v158_v34 = vmul.f32 %v2183_v1, %v26_v30  ;;  %v30_v42 = vld [vmem:[%s3442_s0 + $0x78] sm:$0xff]  ;;  %v31_v47 = vld [vmem:[%s3442_s0 + $0x80] sm:$0xff]  ;;  %v32_v48 = vld [vmem:[%s3442_s0 + $0x88] sm:$0xff] }
   0x8   :  { %v159_v39 = vmul.f32 %v2183_v1, %v27_v35  ;;  %v160_v40 = vmul.f32 %v2183_v1, %v28_v36  ;;  %v161_v45 = vmul.f32 %v2183_v1, %v29_v41  ;;  %v162_v46 = vmul.f32 %v2183_v1, %v30_v42  ;;  %v33_v53 = vld [vmem:[%s3442_s0 + $0x90] sm:$0xff]  ;;  %v34_v54 = vld [vmem:[%s3442_s0 + $0x98] sm:$0xff]  ;;  %v35_v59 = vld [vmem:[%s3442_s0 + $0xa0] sm:$0xff] }
   0x9   :  { %v297_v31 = vsel %vm272_vm0, %v155_v27, 0.0  ;;  %v300_v32 = vsel %vm272_vm0, %v156_v28, 0.0  ;;  %v303_v37 = vsel %vm272_vm0, %v157_v33, 0.0  ;;  %v306_v38 = vsel %vm272_vm0, %v158_v34, 0.0  ;;  %v36_v60 = vld [vmem:[%s3442_s0 + $0xa8] sm:$0xff]  ;;  %v37_v2 = vld [vmem:[%s3442_s0 + $0xb0] sm:$0xff] }
   0xa   :  { %277 = vadd.xlane.f32.xlu0 %v276_v13  ;;  %283 = vadd.xlane.f32.xlu1 %v282_v14  ;;  %v309_v43 = vsel %vm272_vm0, %v159_v39, 0.0  ;;  %v312_v44 = vsel %vm272_vm0, %v160_v40, 0.0  ;;  %v315_v49 = vsel %vm272_vm0, %v161_v45, 0.0  ;;  %v318_v50 = vsel %vm272_vm0, %v162_v46, 0.0  ;;  %v38_v3 = vld [vmem:[%s3442_s0 + $0xb8] sm:$0xff]  ;;  %v39_v8 = vld [vmem:[%s3442_s0 + $0xc0] sm:$0xff] }
   0xb   :  { %v163_v51 = vmul.f32 %v2183_v1, %v31_v47  ;;  %v164_v52 = vmul.f32 %v2183_v1, %v32_v48  ;;  %v165_v57 = vmul.f32 %v2183_v1, %v33_v53  ;;  %v166_v58 = vmul.f32 %v2183_v1, %v34_v54  ;;  %v40_v9 = vld [vmem:[%s3442_s0 + $0xc8] sm:$0xff]  ;;  %v41_v14 = vld [vmem:[%s3442_s0 + $0xd0] sm:$0xff]  ;;  %v42_v15 = vld [vmem:[%s3442_s0 + $0xd8] sm:$0xff] }
   0xc   :  { %v167_v63 = vmul.f32 %v2183_v1, %v35_v59  ;;  %v168_v0 = vmul.f32 %v2183_v1, %v36_v60  ;;  %v169_v6 = vmul.f32 %v2183_v1, %v37_v2  ;;  %v170_v7 = vmul.f32 %v2183_v1, %v38_v3  ;;  %v44_v21 = vld [vmem:[%s3442_s0 + $0xe8] sm:$0xff]  ;;  %v46_v27 = vld [vmem:[%s3442_s0 + $0xf8] sm:$0xff] }
   0xd   :  { %v321_v55 = vsel %vm272_vm0, %v163_v51, 0.0  ;;  %v324_v56 = vsel %vm272_vm0, %v164_v52, 0.0  ;;  %v327_v61 = vsel %vm272_vm0, %v165_v57, 0.0  ;;  %v330_v62 = vsel %vm272_vm0, %v166_v58, 0.0  ;;  %v48_v33 = vld [vmem:[%s3442_s0 + $0x108] sm:$0xff]  ;;  %v50_v39 = vld [vmem:[%s3442_s0 + $0x118] sm:$0xff] }
   0xe   :  { %286 = vadd.xlane.f32.xlu0 %v285_v19  ;;  %289 = vadd.xlane.f32.xlu1 %v288_v20  ;;  %v333_v4 = vsel %vm272_vm0, %v167_v63, 0.0  ;;  %v336_v5 = vsel %vm272_vm0, %v168_v0, 0.0  ;;  %v339_v10 = vsel %vm272_vm0, %v169_v6, 0.0  ;;  %v342_v11 = vsel %vm272_vm0, %v170_v7, 0.0  ;;  %v43_v20 = vld [vmem:[%s3442_s0 + $0xe0] sm:$0xff]  ;;  %v52_v45 = vld [vmem:[%s3442_s0 + $0x128] sm:$0xff] }
   0xf   :  { %v171_v12 = vmul.f32 %v2183_v1, %v39_v8  ;;  %v172_v13 = vmul.f32 %v2183_v1, %v40_v9  ;;  %v173_v18 = vmul.f32 %v2183_v1, %v41_v14  ;;  %v174_v19 = vmul.f32 %v2183_v1, %v42_v15  ;;  %v54_v51 = vld [vmem:[%s3442_s0 + $0x138] sm:$0xff]  ;;  %v56_v57 = vld [vmem:[%s3442_s0 + $0x148] sm:$0xff] }
  0x10   :  { %v175_v24 = vmul.f32 %v2183_v1, %v43_v20  ;;  %v58_v63 = vld [vmem:[%s3442_s0 + $0x158] sm:$0xff]  ;;  %v60_v6 = vld [vmem:[%s3442_s0 + $0x168] sm:$0xff] }
  0x11   :  { %v345_v16 = vsel %vm272_vm0, %v171_v12, 0.0  ;;  %v348_v17 = vsel %vm272_vm0, %v172_v13, 0.0  ;;  %v351_v22 = vsel %vm272_vm0, %v173_v18, 0.0  ;;  %v354_v23 = vsel %vm272_vm0, %v174_v19, 0.0  ;;  %v62_v12 = vld [vmem:[%s3442_s0 + $0x178] sm:$0xff]  ;;  %v64_v18 = vld [vmem:[%s3442_s0 + $0x188] sm:$0xff] }
  0x12   :  { %292 = vadd.xlane.f32.xlu0 %v291_v25  ;;  %295 = vadd.xlane.f32.xlu1 %v294_v26  ;;  %v176_v25 = vmul.f32 %v2183_v1, %v44_v21  ;;  %v45_v26 = vld [vmem:[%s3442_s0 + $0xf0] sm:$0xff]  ;;  %v357_v28 = vsel %vm272_vm0, %v175_v24, 0.0  ;;  %v66_v24 = vld [vmem:[%s3442_s0 + $0x198] sm:$0xff] }
  0x13   :  { %v177_v30 = vmul.f32 %v2183_v1, %v45_v26 }
  0x14   :  { %v360_v29 = vsel %vm272_vm0, %v176_v25, 0.0 }
  0x15   :  { %v363_v34 = vsel %vm272_vm0, %v177_v30, 0.0  ;;  %v68_v30 = vld [vmem:[%s3442_s0 + $0x1a8] sm:$0xff] }
  0x16   :  { %298 = vadd.xlane.f32.xlu0 %v297_v31  ;;  %301 = vadd.xlane.f32.xlu1 %v300_v32  ;;  %v178_v31 = vmul.f32 %v2183_v1, %v46_v27  ;;  %v47_v32 = vld [vmem:[%s3442_s0 + $0x100] sm:$0xff] }
  0x17   :  { %v179_v36 = vmul.f32 %v2183_v1, %v47_v32 }
  0x18   :  { %v366_v35 = vsel %vm272_vm0, %v178_v31, 0.0 }
  0x19   :  { %v369_v40 = vsel %vm272_vm0, %v179_v36, 0.0  ;;  %v70_v36 = vld [vmem:[%s3442_s0 + $0x1b8] sm:$0xff] }
  0x1a   :  { %304 = vadd.xlane.f32.xlu0 %v303_v37  ;;  %307 = vadd.xlane.f32.xlu1 %v306_v38  ;;  %v180_v37 = vmul.f32 %v2183_v1, %v48_v33  ;;  %v49_v38 = vld [vmem:[%s3442_s0 + $0x110] sm:$0xff] }
  0x1b   :  { %v181_v42 = vmul.f32 %v2183_v1, %v49_v38 }
  0x1c   :  { %v372_v41 = vsel %vm272_vm0, %v180_v37, 0.0 }
  0x1d   :  { %v375_v46 = vsel %vm272_vm0, %v181_v42, 0.0  ;;  %v72_v42 = vld [vmem:[%s3442_s0 + $0x1c8] sm:$0xff] }
  0x1e   :  { %310 = vadd.xlane.f32.xlu0 %v309_v43  ;;  %313 = vadd.xlane.f32.xlu1 %v312_v44  ;;  %v182_v43 = vmul.f32 %v2183_v1, %v50_v39  ;;  %v51_v44 = vld [vmem:[%s3442_s0 + $0x120] sm:$0xff] }
  0x1f   :  { %v183_v48 = vmul.f32 %v2183_v1, %v51_v44 }
  0x20   :  { %v378_v47 = vsel %vm272_vm0, %v182_v43, 0.0 }
  0x21   :  { %v381_v52 = vsel %vm272_vm0, %v183_v48, 0.0  ;;  %v74_v48 = vld [vmem:[%s3442_s0 + $0x1d8] sm:$0xff] }
  0x22   :  { %316 = vadd.xlane.f32.xlu0 %v315_v49  ;;  %319 = vadd.xlane.f32.xlu1 %v318_v50  ;;  %v184_v49 = vmul.f32 %v2183_v1, %v52_v45  ;;  %v53_v50 = vld [vmem:[%s3442_s0 + $0x130] sm:$0xff] }
  0x23   :  { %v185_v54 = vmul.f32 %v2183_v1, %v53_v50 }
  0x24   :  { %v384_v53 = vsel %vm272_vm0, %v184_v49, 0.0 }
  0x25   :  { %v387_v58 = vsel %vm272_vm0, %v185_v54, 0.0  ;;  %v76_v54 = vld [vmem:[%s3442_s0 + $0x1e8] sm:$0xff] }
  0x26   :  { %322 = vadd.xlane.f32.xlu0 %v321_v55  ;;  %325 = vadd.xlane.f32.xlu1 %v324_v56  ;;  %v186_v55 = vmul.f32 %v2183_v1, %v54_v51  ;;  %v55_v56 = vld [vmem:[%s3442_s0 + $0x140] sm:$0xff] }
  0x27   :  { %v187_v60 = vmul.f32 %v2183_v1, %v55_v56 }
  0x28   :  { %v390_v59 = vsel %vm272_vm0, %v186_v55, 0.0 }
  0x29   :  { %v393_v0 = vsel %vm272_vm0, %v187_v60, 0.0  ;;  %v78_v60 = vld [vmem:[%s3442_s0 + $0x1f8] sm:$0xff] }
  0x2a   :  { %328 = vadd.xlane.f32.xlu0 %v327_v61  ;;  %331 = vadd.xlane.f32.xlu1 %v330_v62  ;;  %v188_v61 = vmul.f32 %v2183_v1, %v56_v57  ;;  %v57_v62 = vld [vmem:[%s3442_s0 + $0x150] sm:$0xff] }
  0x2b   :  { %v189_v3 = vmul.f32 %v2183_v1, %v57_v62 }
  0x2c   :  { %v396_v2 = vsel %vm272_vm0, %v188_v61, 0.0 }
  0x2d   :  { %v399_v7 = vsel %vm272_vm0, %v189_v3, 0.0  ;;  %v80_v3 = vld [vmem:[%s3442_s0 + $0x208] sm:$0xff] }
  0x2e   :  { %334 = vadd.xlane.f32.xlu0 %v333_v4  ;;  %337 = vadd.xlane.f32.xlu1 %v336_v5  ;;  %v190_v4 = vmul.f32 %v2183_v1, %v58_v63  ;;  %v59_v5 = vld [vmem:[%s3442_s0 + $0x160] sm:$0xff] }
  0x2f   :  { %v191_v9 = vmul.f32 %v2183_v1, %v59_v5 }
  0x30   :  { %v402_v8 = vsel %vm272_vm0, %v190_v4, 0.0 }
  0x31   :  { %v405_v13 = vsel %vm272_vm0, %v191_v9, 0.0  ;;  %v82_v9 = vld [vmem:[%s3442_s0 + $0x218] sm:$0xff] }
  0x32   :  { %340 = vadd.xlane.f32.xlu0 %v339_v10  ;;  %343 = vadd.xlane.f32.xlu1 %v342_v11  ;;  %v192_v10 = vmul.f32 %v2183_v1, %v60_v6  ;;  %v61_v11 = vld [vmem:[%s3442_s0 + $0x170] sm:$0xff] }
  0x33   :  { %v193_v15 = vmul.f32 %v2183_v1, %v61_v11 }
  0x34   :  { %v408_v14 = vsel %vm272_vm0, %v192_v10, 0.0 }
  0x35   :  { %v411_v19 = vsel %vm272_vm0, %v193_v15, 0.0  ;;  %v84_v15 = vld [vmem:[%s3442_s0 + $0x228] sm:$0xff] }
  0x36   :  { %346 = vadd.xlane.f32.xlu0 %v345_v16  ;;  %349 = vadd.xlane.f32.xlu1 %v348_v17  ;;  %v194_v16 = vmul.f32 %v2183_v1, %v62_v12  ;;  %v63_v17 = vld [vmem:[%s3442_s0 + $0x180] sm:$0xff] }
  0x37   :  { %v195_v21 = vmul.f32 %v2183_v1, %v63_v17 }
  0x38   :  { %v414_v20 = vsel %vm272_vm0, %v194_v16, 0.0 }
  0x39   :  { %v417_v25 = vsel %vm272_vm0, %v195_v21, 0.0  ;;  %v86_v21 = vld [vmem:[%s3442_s0 + $0x238] sm:$0xff] }
  0x3a   :  { %352 = vadd.xlane.f32.xlu0 %v351_v22  ;;  %355 = vadd.xlane.f32.xlu1 %v354_v23  ;;  %v196_v22 = vmul.f32 %v2183_v1, %v64_v18  ;;  %v65_v23 = vld [vmem:[%s3442_s0 + $0x190] sm:$0xff] }
  0x3b   :  { %v197_v27 = vmul.f32 %v2183_v1, %v65_v23 }
  0x3c   :  { %v420_v26 = vsel %vm272_vm0, %v196_v22, 0.0 }
  0x3d   :  { %v423_v31 = vsel %vm272_vm0, %v197_v27, 0.0  ;;  %v88_v27 = vld [vmem:[%s3442_s0 + $0x248] sm:$0xff] }
  0x3e   :  { %358 = vadd.xlane.f32.xlu0 %v357_v28  ;;  %361 = vadd.xlane.f32.xlu1 %v360_v29  ;;  %v198_v28 = vmul.f32 %v2183_v1, %v66_v24  ;;  %v67_v29 = vld [vmem:[%s3442_s0 + $0x1a0] sm:$0xff] }
  0x3f   :  { %v199_v33 = vmul.f32 %v2183_v1, %v67_v29 }
  0x40   :  { %v426_v32 = vsel %vm272_vm0, %v198_v28, 0.0 }
  0x41   :  { %v429_v37 = vsel %vm272_vm0, %v199_v33, 0.0  ;;  %v90_v33 = vld [vmem:[%s3442_s0 + $0x258] sm:$0xff] }
  0x42   :  { %364 = vadd.xlane.f32.xlu0 %v363_v34  ;;  %367 = vadd.xlane.f32.xlu1 %v366_v35  ;;  %v200_v34 = vmul.f32 %v2183_v1, %v68_v30  ;;  %v69_v35 = vld [vmem:[%s3442_s0 + $0x1b0] sm:$0xff] }
  0x43   :  { %v201_v39 = vmul.f32 %v2183_v1, %v69_v35 }
  0x44   :  { %v432_v38 = vsel %vm272_vm0, %v200_v34, 0.0  ;;  %v2559_v34 = vstv %s3444_s2 }
  0x45   :  { %v435_v43 = vsel %vm272_vm0, %v201_v39, 0.0 }
  0x46   :  { %370 = vadd.xlane.f32.xlu0 %v369_v40  ;;  %373 = vadd.xlane.f32.xlu1 %v372_v41  ;;  %v202_v40 = vmul.f32 %v2183_v1, %v70_v36  ;;  %v71_v41 = vld [vmem:[%s3442_s0 + $0x1c0] sm:$0xff] }
  0x47   :  { %v203_v45 = vmul.f32 %v2183_v1, %v71_v41 }
  0x48   :  { %v438_v44 = vsel %vm272_vm0, %v202_v40, 0.0  ;;  %v222_v40 = vmul.f32 %v2183_v1, %v90_v33 }
  0x49   :  { %v441_v49 = vsel %vm272_vm0, %v203_v45, 0.0 }
  0x4a   :  { %376 = vadd.xlane.f32.xlu0 %v375_v46  ;;  %379 = vadd.xlane.f32.xlu1 %v378_v47  ;;  %v204_v46 = vmul.f32 %v2183_v1, %v72_v42  ;;  %v73_v47 = vld [vmem:[%s3442_s0 + $0x1d0] sm:$0xff] }
  0x4b   :  { %v205_v51 = vmul.f32 %v2183_v1, %v73_v47 }
  0x4c   :  { %v444_v50 = vsel %vm272_vm0, %v204_v46, 0.0 }
  0x4d   :  { %v447_v55 = vsel %vm272_vm0, %v205_v51, 0.0 }
  0x4e   :  { %382 = vadd.xlane.f32.xlu0 %v381_v52  ;;  %385 = vadd.xlane.f32.xlu1 %v384_v53  ;;  %v206_v52 = vmul.f32 %v2183_v1, %v74_v48  ;;  %v75_v53 = vld [vmem:[%s3442_s0 + $0x1e0] sm:$0xff] }
  0x4f   :  { %v207_v57 = vmul.f32 %v2183_v1, %v75_v53  ;;  %v93_v53 = vld [vmem:[%s3442_s0 + $0x270] sm:$0xff] }
  0x50   :  { %v450_v56 = vsel %vm272_vm0, %v206_v52, 0.0 }
  0x51   :  { %v453_v61 = vsel %vm272_vm0, %v207_v57, 0.0 }
  0x52   :  { %388 = vadd.xlane.f32.xlu0 %v387_v58  ;;  %391 = vadd.xlane.f32.xlu1 %v390_v59  ;;  %v208_v58 = vmul.f32 %v2183_v1, %v76_v54  ;;  %v77_v59 = vld [vmem:[%s3442_s0 + $0x1f0] sm:$0xff] }
  0x53   :  { %v209_v63 = vmul.f32 %v2183_v1, %v77_v59 }
  0x54   :  { %v456_v62 = vsel %vm272_vm0, %v208_v58, 0.0  ;;  %v94_v58 = vld [vmem:[%s3442_s0 + $0x278] sm:$0xff] }
  0x55   :  { %v459_v4 = vsel %vm272_vm0, %v209_v63, 0.0 }
  0x56   :  { %394 = vadd.xlane.f32.xlu0 %v393_v0  ;;  %397 = vadd.xlane.f32.xlu1 %v396_v2  ;;  %v210_v0 = vmul.f32 %v2183_v1, %v78_v60  ;;  %v79_v2 = vld [vmem:[%s3442_s0 + $0x200] sm:$0xff] }
  0x57   :  { %v211_v6 = vmul.f32 %v2183_v1, %v79_v2 }
  0x58   :  { %v462_v5 = vsel %vm272_vm0, %v210_v0, 0.0 }
  0x59   :  { %v465_v10 = vsel %vm272_vm0, %v211_v6, 0.0 }
  0x5a   :  { %400 = vadd.xlane.f32.xlu0 %v399_v7  ;;  %403 = vadd.xlane.f32.xlu1 %v402_v8  ;;  %v212_v7 = vmul.f32 %v2183_v1, %v80_v3  ;;  %v81_v8 = vld [vmem:[%s3442_s0 + $0x210] sm:$0xff]  ;;  %v226_v3 = vmul.f32 %v2183_v1, %v94_v58 }
  0x5b   :  { %v213_v12 = vmul.f32 %v2183_v1, %v81_v8  ;;  %v95_v8 = vld [vmem:[%s3442_s0 + $0x280] sm:$0xff] }
  0x5c   :  { %v468_v11 = vsel %vm272_vm0, %v212_v7, 0.0 }
  0x5d   :  { %v471_v16 = vsel %vm272_vm0, %v213_v12, 0.0 }
  0x5e   :  { %406 = vadd.xlane.f32.xlu0 %v405_v13  ;;  %409 = vadd.xlane.f32.xlu1 %v408_v14  ;;  %v214_v13 = vmul.f32 %v2183_v1, %v82_v9  ;;  %v83_v14 = vld [vmem:[%s3442_s0 + $0x220] sm:$0xff]  ;;  %v96_v9 = vld [vmem:[%s3442_s0 + $0x288] sm:$0xff] }
  0x5f   :  { %v215_v18 = vmul.f32 %v2183_v1, %v83_v14 }
  0x60   :  { %v474_v17 = vsel %vm272_vm0, %v214_v13, 0.0 }
  0x61   :  { %v477_v22 = vsel %vm272_vm0, %v215_v18, 0.0  ;;  %v97_v18 = vld [vmem:[%s3442_s0 + $0x290] sm:$0xff] }
  0x62   :  { %412 = vadd.xlane.f32.xlu0 %v411_v19  ;;  %415 = vadd.xlane.f32.xlu1 %v414_v20  ;;  %v216_v19 = vmul.f32 %v2183_v1, %v84_v15  ;;  %v85_v20 = vld [vmem:[%s3442_s0 + $0x230] sm:$0xff]  ;;  %v510_v15 = vsel %vm272_vm0, %v226_v3, 0.0 }
  0x63   :  { %v217_v24 = vmul.f32 %v2183_v1, %v85_v20 }
  0x64   :  { %v480_v23 = vsel %vm272_vm0, %v216_v19, 0.0 }
  0x65   :  { %v483_v28 = vsel %vm272_vm0, %v217_v24, 0.0  ;;  %v99_v24 = vld [vmem:[%s3442_s0 + $0x2a0] sm:$0xff] }
  0x66   :  { %418 = vadd.xlane.f32.xlu0 %v417_v25  ;;  %421 = vadd.xlane.f32.xlu1 %v420_v26  ;;  %v218_v25 = vmul.f32 %v2183_v1, %v86_v21  ;;  %v87_v26 = vld [vmem:[%s3442_s0 + $0x240] sm:$0xff] }
  0x67   :  { %v219_v30 = vmul.f32 %v2183_v1, %v87_v26 }
  0x68   :  { %v486_v29 = vsel %vm272_vm0, %v218_v25, 0.0 }
  0x69   :  { %v489_v36 = vsel %vm272_vm0, %v219_v30, 0.0 }
  0x6a   :  { %424 = vadd.xlane.f32.xlu0 %v423_v31  ;;  %427 = vadd.xlane.f32.xlu1 %v426_v32  ;;  %v220_v31 = vmul.f32 %v2183_v1, %v88_v27  ;;  %v89_v32 = vld [vmem:[%s3442_s0 + $0x250] sm:$0xff]  ;;  %v229_v27 = vmul.f32 %v2183_v1, %v97_v18 }
  0x6b   :  { %v221_v39 = vmul.f32 %v2183_v1, %v89_v32 }
  0x6d   :  { %v495_v48 = vsel %vm272_vm0, %v221_v39, 0.0  ;;  %v231_v39 = vmul.f32 %v2183_v1, %v99_v24 }
  0x6e   :  { %430 = vadd.xlane.f32.xlu0 %v429_v37  ;;  %433 = vadd.xlane.f32.xlu1 %v432_v38  ;;  %v492_v38 = vsel %vm272_vm0, %v220_v31, 0.0 }
  0x72   :  { %436 = vadd.xlane.f32.xlu0 %v435_v43  ;;  %439 = vadd.xlane.f32.xlu1 %v438_v44  ;;  %v91_v43 = vld [vmem:[%s3442_s0 + $0x260] sm:$0xff]  ;;  %v92_v44 = vld [vmem:[%s3442_s0 + $0x268] sm:$0xff] }
  0x73   :  { %v223_v51 = vmul.f32 %v2183_v1, %v91_v43  ;;  %v224_v52 = vmul.f32 %v2183_v1, %v92_v44 }
  0x75   :  { %v501_v63 = vsel %vm272_vm0, %v223_v51, 0.0  ;;  %v504_v2 = vsel %vm272_vm0, %v224_v52, 0.0 }
  0x76   :  { %442 = vadd.xlane.f32.xlu0 %v441_v49  ;;  %445 = vadd.xlane.f32.xlu1 %v444_v50  ;;  %v498_v50 = vsel %vm272_vm0, %v222_v40, 0.0  ;;  %v101_v40 = vld [vmem:[%s3442_s0 + $0x2b0] sm:$0xff] }
  0x77   :  { %v233_v52 = vmul.f32 %v2183_v1, %v101_v40 }
  0x7a   :  { %448 = vadd.xlane.f32.xlu0 %v447_v55  ;;  %451 = vadd.xlane.f32.xlu1 %v450_v56 }
  0x7e   :  { %454 = vadd.xlane.f32.xlu0 %v453_v61  ;;  %457 = vadd.xlane.f32.xlu1 %v456_v62  ;;  %v225_v61 = vmul.f32 %v2183_v1, %v93_v53 }
  0x80   :  { %v507_v12 = vsel %vm272_vm0, %v225_v61, 0.0 }
  0x82   :  { %460 = vadd.xlane.f32.xlu0 %v459_v4  ;;  %463 = vadd.xlane.f32.xlu1 %v462_v5 }
  0x86   :  { %466 = vadd.xlane.f32.xlu0 %v465_v10  ;;  %469 = vadd.xlane.f32.xlu1 %v468_v11 }
  0x8a   :  { %472 = vadd.xlane.f32.xlu0 %v471_v16  ;;  %475 = vadd.xlane.f32.xlu1 %v474_v17  ;;  %v227_v16 = vmul.f32 %v2183_v1, %v95_v8  ;;  %v228_v17 = vmul.f32 %v2183_v1, %v96_v9 }
  0x8c   :  { %v513_v30 = vsel %vm272_vm0, %v227_v16, 0.0  ;;  %v516_v32 = vsel %vm272_vm0, %v228_v17, 0.0 }
  0x8e   :  { %478 = vadd.xlane.f32.xlu0 %v477_v22  ;;  %481 = vadd.xlane.f32.xlu1 %v480_v23  ;;  %v98_v23 = vld [vmem:[%s3442_s0 + $0x298] sm:$0xff] }
  0x8f   :  { %v230_v33 = vmul.f32 %v2183_v1, %v98_v23 }
  0x91   :  { %v522_v51 = vsel %vm272_vm0, %v230_v33, 0.0 }
  0x92   :  { %484 = vadd.xlane.f32.xlu0 %v483_v28  ;;  %487 = vadd.xlane.f32.xlu1 %v486_v29  ;;  %v100_v28 = vld [vmem:[%s3442_s0 + $0x2a8] sm:$0xff] }
  0x93   :  { %v275_v35 = vpop.xlane.xlu0 %274  ;;  %v281_v37 = vpop.xlane.xlu1 %280  ;;  %v232_v44 = vmul.f32 %v2183_v1, %v100_v28 }
  0x94   :  { %v650_v41 = vadd.f32 %v2559_v34, %v275_v35  ;;  %v652_v42 = vadd.f32 %v2559_v34, %v281_v37 }
  0x96   :  { %v775_v45 = vsub.f32 0.0, %v650_v41  ;;  %490 = vadd.xlane.f32.xlu0 %v489_v36  ;;  %v777_v46 = vsub.f32 0.0, %v652_v42  ;;  %493 = vadd.xlane.f32.xlu1 %v492_v38 }
  0x97   :  { %v278_v47 = vpop.xlane.xlu0 %277  ;;  %v284_v49 = vpop.xlane.xlu1 %283 }
  0x98   :  { %v900_v54 = vmul.f32 1.442695, %v775_v45  ;;  %v904_v55 = vmul.f32 1.442695, %v777_v46  ;;  %v651_v56 = vadd.f32 %v2559_v34, %v278_v47  ;;  %v653_v57 = vadd.f32 %v2559_v34, %v284_v49 }
  0x99   :  { %v519_v49 = vsel %vm272_vm0, %v229_v27, 0.0 }
  0x9a   :  { %1656 = vpow2.f32 %v900_v54  ;;  %v776_v59 = vsub.f32 0.0, %v651_v56  ;;  %496 = vadd.xlane.f32.xlu0 %v495_v48  ;;  %v778_v60 = vsub.f32 0.0, %v653_v57  ;;  %499 = vadd.xlane.f32.xlu1 %v498_v50  ;;  %v525_v56 = vsel %vm272_vm0, %v231_v39, 0.0  ;;  %v102_v57 = vld [vmem:[%s3442_s0 + $0x2b8] sm:$0xff]  ;;  %v107_v39 = vld [vmem:[%s3442_s0 + $0x2e0] sm:$0xff] }
  0x9b   :  { %1658 = vpow2.f32 %v904_v55  ;;  %v287_v62 = vpop.xlane.xlu0 %286  ;;  %v290_v0 = vpop.xlane.xlu1 %289 }
  0x9c   :  { %v902_v4 = vmul.f32 1.442695, %v776_v59  ;;  %v906_v5 = vmul.f32 1.442695, %v778_v60  ;;  %v654_v6 = vadd.f32 %v2559_v34, %v287_v62  ;;  %v655_v7 = vadd.f32 %v2559_v34, %v290_v0 }
  0x9d   :  { %v528_v0 = vsel %vm272_vm0, %v232_v44, 0.0 }
  0x9e   :  { %1660 = vpow2.f32 %v902_v4  ;;  %v779_v10 = vsub.f32 0.0, %v654_v6  ;;  %502 = vadd.xlane.f32.xlu0 %v501_v63  ;;  %v780_v11 = vsub.f32 0.0, %v655_v7  ;;  %505 = vadd.xlane.f32.xlu1 %v504_v2  ;;  %v103_v2 = vld [vmem:[%s3442_s0 + $0x2c0] sm:$0xff]  ;;  %v531_v6 = vsel %vm272_vm0, %v233_v52, 0.0  ;;  %v110_v52 = vld [vmem:[%s3442_s0 + $0x2f8] sm:$0xff] }
  0x9f   :  { %1662 = vpow2.f32 %v906_v5  ;;  %v293_v13 = vpop.xlane.xlu0 %292  ;;  %v296_v14 = vpop.xlane.xlu1 %295  ;;  %v234_v7 = vmul.f32 %v2183_v1, %v102_v57  ;;  %v235_v17 = vmul.f32 %v2183_v1, %v103_v2  ;;  %v239_v57 = vmul.f32 %v2183_v1, %v107_v39  ;;  %v114_v39 = vld [vmem:[%s3442_s0 + $0x318] sm:$0xff] }
  0xa0   :  { %v908_v19 = vmul.f32 1.442695, %v779_v10  ;;  %v910_v20 = vmul.f32 1.442695, %v780_v11  ;;  %v656_v21 = vadd.f32 %v2559_v34, %v293_v13  ;;  %v657_v22 = vadd.f32 %v2559_v34, %v296_v14  ;;  %v105_v13 = vld [vmem:[%s3442_s0 + $0x2d0] sm:$0xff] }
  0xa1   :  { %v534_v23 = vsel %vm272_vm0, %v234_v7, 0.0 }
  0xa2   :  { %1664 = vpow2.f32 %v908_v19  ;;  %v781_v25 = vsub.f32 0.0, %v656_v21  ;;  %508 = vadd.xlane.f32.xlu0 %v507_v12  ;;  %v782_v26 = vsub.f32 0.0, %v657_v22  ;;  %511 = vadd.xlane.f32.xlu1 %v510_v15  ;;  %v104_v12 = vld [vmem:[%s3442_s0 + $0x2c8] sm:$0xff] }
  0xa3   :  { %1666 = vpow2.f32 %v910_v20  ;;  %v299_v29 = vpop.xlane.xlu0 %298  ;;  %v302_v31 = vpop.xlane.xlu1 %301  ;;  %v236_v24 = vmul.f32 %v2183_v1, %v104_v12 }
  0xa4   :  { %v1657_v35 = vpop.eup %1656  ;;  %v912_v36 = vmul.f32 1.442695, %v781_v25  ;;  %v658_v37 = vadd.f32 %v2559_v34, %v299_v29  ;;  %v659_v38 = vadd.f32 %v2559_v34, %v302_v31  ;;  %v914_v43 = vmul.f32 1.442695, %v782_v26  ;;  %v106_v26 = vld [vmem:[%s3442_s0 + $0x2d8] sm:$0xff] }
  0xa5   :  { %v1659_v41 = vpop.eup %1658  ;;  %v1150_v42 = vadd.f32 1.0, %v1657_v35  ;;  %v237_v25 = vmul.f32 %v2183_v1, %v105_v13  ;;  %v540_v44 = vsel %vm272_vm0, %v236_v24, 0.0  ;;  %v112_v24 = vld [vmem:[%s3442_s0 + $0x308] sm:$0xff] }
  0xa6   :  { %v1152_v45 = vadd.f32 1.0, %v1659_v41  ;;  %1668 = vpow2.f32 %v912_v36  ;;  %v783_v46 = vsub.f32 0.0, %v658_v37  ;;  %514 = vadd.xlane.f32.xlu0 %v513_v30  ;;  %v784_v47 = vsub.f32 0.0, %v659_v38  ;;  %517 = vadd.xlane.f32.xlu1 %v516_v32 }
  0xa7   :  { %1670 = vrcp.f32 %v1150_v42  ;;  %v305_v48 = vpop.xlane.xlu0 %304  ;;  %v308_v50 = vpop.xlane.xlu1 %307  ;;  %v537_v37 = vsel %vm272_vm0, %v235_v17, 0.0  ;;  %v238_v38 = vmul.f32 %v2183_v1, %v106_v26 }
  0xa8   :  { %v1661_v53 = vpop.eup %1660  ;;  %1672 = vrcp.f32 %v1152_v45  ;;  %v916_v54 = vmul.f32 1.442695, %v783_v46  ;;  %v660_v55 = vadd.f32 %v2559_v34, %v305_v48  ;;  %v918_v60 = vmul.f32 1.442695, %v784_v47  ;;  %v108_v46 = vld [vmem:[%s3442_s0 + $0x2e8] sm:$0xff] }
  0xa9   :  { %v1663_v58 = vpop.eup %1662  ;;  %v1151_v59 = vadd.f32 1.0, %v1661_v53  ;;  %1674 = vpow2.f32 %v914_v43  ;;  %v661_v61 = vadd.f32 %v2559_v34, %v308_v50  ;;  %v543_v45 = vsel %vm272_vm0, %v237_v25, 0.0 }
  0xaa   :  { %v1153_v62 = vadd.f32 1.0, %v1663_v58  ;;  %1676 = vpow2.f32 %v916_v54  ;;  %v785_v63 = vsub.f32 0.0, %v660_v55  ;;  %520 = vadd.xlane.f32.xlu0 %v519_v49  ;;  %523 = vadd.xlane.f32.xlu1 %v522_v51  ;;  %v109_v51 = vld [vmem:[%s3442_s0 + $0x2f0] sm:$0xff] }
  0xab   :  { %1678 = vrcp.f32 %v1151_v59  ;;  %v786_v3 = vsub.f32 0.0, %v661_v61  ;;  %v311_v4 = vpop.xlane.xlu0 %310  ;;  %v314_v5 = vpop.xlane.xlu1 %313  ;;  %v240_v61 = vmul.f32 %v2183_v1, %v108_v46 }
  0xac   :  { %v1665_v8 = vpop.eup %1664  ;;  %1680 = vrcp.f32 %v1153_v62  ;;  %v920_v9 = vmul.f32 1.442695, %v785_v63  ;;  %v662_v10 = vadd.f32 %v2559_v34, %v311_v4  ;;  %v663_v11 = vadd.f32 %v2559_v34, %v314_v5 }
  0xad   :  { %v1667_v14 = vpop.eup %1666  ;;  %v1154_v15 = vadd.f32 1.0, %v1665_v8  ;;  %1682 = vpow2.f32 %v918_v60  ;;  %v922_v16 = vmul.f32 1.442695, %v786_v3  ;;  %v546_v60 = vsel %vm272_vm0, %v238_v38, 0.0 }
  0xae   :  { %v1155_v18 = vadd.f32 1.0, %v1667_v14  ;;  %1684 = vpow2.f32 %v920_v9  ;;  %v787_v19 = vsub.f32 0.0, %v662_v10  ;;  %526 = vadd.xlane.f32.xlu0 %v525_v56  ;;  %v788_v20 = vsub.f32 0.0, %v663_v11  ;;  %529 = vadd.xlane.f32.xlu1 %v528_v0  ;;  %v111_v9 = vld [vmem:[%s3442_s0 + $0x300] sm:$0xff] }
  0xaf   :  { %1686 = vrcp.f32 %v1154_v15  ;;  %v317_v21 = vpop.xlane.xlu0 %316  ;;  %v320_v22 = vpop.xlane.xlu1 %319  ;;  %v241_v3 = vmul.f32 %v2183_v1, %v109_v51  ;;  %v242_v4 = vmul.f32 %v2183_v1, %v110_v52  ;;  %v549_v15 = vsel %vm272_vm0, %v239_v57, 0.0 }
  0xb0   :  { %v1669_v27 = vpop.eup %1668  ;;  %1688 = vrcp.f32 %v1155_v18  ;;  %v924_v28 = vmul.f32 1.442695, %v787_v19  ;;  %v926_v29 = vmul.f32 1.442695, %v788_v20  ;;  %v664_v30 = vadd.f32 %v2559_v34, %v317_v21 }
  0xb1   :  { %v1671_v31 = vpop.eup %1670  ;;  %v1156_v32 = vadd.f32 1.0, %v1669_v27  ;;  %1690 = vpow2.f32 %v922_v16  ;;  %v665_v33 = vadd.f32 %v2559_v34, %v320_v22  ;;  %v552_v16 = vsel %vm272_vm0, %v240_v61, 0.0  ;;  %v2716_v22 = vld [vmem:[%s3443_s1] ss:$0 sm:$0xff] }
  0xb2   :  { %v1673_v35 = vpop.eup %1672  ;;  %1526 = vst.msk [vmem:[%s3445_s3] sm:$0xff] %vm1525_vm1, %v1671_v31  ;;  %1692 = vpow2.f32 %v924_v28  ;;  %v789_v36 = vsub.f32 0.0, %v664_v30  ;;  %532 = vadd.xlane.f32.xlu0 %v531_v6  ;;  %535 = vadd.xlane.f32.xlu1 %v534_v23  ;;  %v555_v21 = vsel %vm272_vm0, %v241_v3, 0.0  ;;  %v243_v23 = vmul.f32 %v2716_v22, %v111_v9  ;;  %v118_v3 = vld [vmem:[%s3442_s0 + $0x338] sm:$0xff] }
  0xb3   :  { %v1675_v40 = vpop.eup %1674  ;;  %1528 = vst.msk [vmem:[%s3445_s3 + $0x10] sm:$0xff] %vm1525_vm1, %v1673_v35  ;;  %1694 = vrcp.f32 %v1156_v32  ;;  %v790_v41 = vsub.f32 0.0, %v665_v33  ;;  %v323_v42 = vpop.xlane.xlu0 %322  ;;  %v558_v33 = vsel %vm272_vm0, %v242_v4, 0.0  ;;  %v244_v38 = vmul.f32 %v2716_v22, %v112_v24 }
  0xb4   :  { %v326_v43 = vpop.xlane.xlu1 %325  ;;  %v1677_v47 = vpop.eup %1676  ;;  %v1157_v48 = vadd.f32 1.0, %v1675_v40  ;;  %1696 = vpow2.f32 %v926_v29  ;;  %v928_v49 = vmul.f32 1.442695, %v789_v36  ;;  %v666_v50 = vadd.f32 %v2559_v34, %v323_v42  ;;  %v113_v29 = vld [vmem:[%s3442_s0 + $0x310] sm:$0xff] }
  0xb5   :  { %v1679_v53 = vpop.eup %1678  ;;  %v1158_v54 = vadd.f32 1.0, %v1677_v47  ;;  %v930_v55 = vmul.f32 1.442695, %v790_v41  ;;  %v667_v56 = vadd.f32 %v2559_v34, %v326_v43  ;;  %v561_v52 = vsel %vm272_vm0, %v243_v23, 0.0 }
  0xb6   :  { %v1681_v58 = vpop.eup %1680  ;;  %1527 = vst.msk [vmem:[%s3445_s3 + $0x8] sm:$0xff] %vm1525_vm1, %v1679_v53  ;;  %1698 = vrcp.f32 %v1157_v48  ;;  %v791_v59 = vsub.f32 0.0, %v666_v50  ;;  %538 = vadd.xlane.f32.xlu0 %v537_v37  ;;  %541 = vadd.xlane.f32.xlu1 %v540_v44  ;;  %v245_v44 = vmul.f32 %v2716_v22, %v113_v29  ;;  %v246_v53 = vmul.f32 %v2716_v22, %v114_v39 }
  0xb7   :  { %v1683_v62 = vpop.eup %1682  ;;  %1529 = vst.msk [vmem:[%s3445_s3 + $0x18] sm:$0xff] %vm1525_vm1, %v1681_v58  ;;  %1700 = vrcp.f32 %v1158_v54  ;;  %v792_v63 = vsub.f32 0.0, %v667_v56  ;;  %v329_v0 = vpop.xlane.xlu0 %328  ;;  %v564_v57 = vsel %vm272_vm0, %v244_v38, 0.0 }
  0xb8   :  { %v332_v2 = vpop.xlane.xlu1 %331  ;;  %v1685_v5 = vpop.eup %1684  ;;  %v1159_v6 = vadd.f32 1.0, %v1683_v62  ;;  %1702 = vpow2.f32 %v928_v49  ;;  %v932_v7 = vmul.f32 1.442695, %v791_v59  ;;  %v668_v8 = vadd.f32 %v2559_v34, %v329_v0  ;;  %v115_v49 = vld [vmem:[%s3442_s0 + $0x320] sm:$0xff]  ;;  %v116_v0 = vld [vmem:[%s3442_s0 + $0x328] sm:$0xff] }
  0xb9   :  { %v1687_v10 = vpop.eup %1686  ;;  %v1160_v11 = vadd.f32 1.0, %v1685_v5  ;;  %1704 = vpow2.f32 %v930_v55  ;;  %v934_v12 = vmul.f32 1.442695, %v792_v63  ;;  %v669_v13 = vadd.f32 %v2559_v34, %v332_v2  ;;  %v117_v2 = vld [vmem:[%s3442_s0 + $0x330] sm:$0xff] }
  0xba   :  { %v1689_v14 = vpop.eup %1688  ;;  %1530 = vst.msk [vmem:[%s3445_s3 + $0x20] sm:$0xff] %vm1525_vm1, %v1687_v10  ;;  %1706 = vrcp.f32 %v1159_v6  ;;  %v793_v1 = vsub.f32 0.0, %v668_v8  ;;  %544 = vadd.xlane.f32.xlu0 %v543_v45  ;;  %547 = vadd.xlane.f32.xlu1 %v546_v60  ;;  %v567_v62 = vsel %vm272_vm0, %v245_v44, 0.0  ;;  %v247_v63 = vmul.f32 %v2716_v22, %v115_v49 }
  0xbb   :  { %v1691_v17 = vpop.eup %1690  ;;  %1531 = vst.msk [vmem:[%s3445_s3 + $0x28] sm:$0xff] %vm1525_vm1, %v1689_v14  ;;  %1708 = vrcp.f32 %v1160_v11  ;;  %v794_v18 = vsub.f32 0.0, %v669_v13  ;;  %v335_v19 = vpop.xlane.xlu0 %334  ;;  %v570_v11 = vsel %vm272_vm0, %v246_v53, 0.0  ;;  %v248_v13 = vmul.f32 %v2716_v22, %v116_v0 }
  0xbc   :  { %v338_v20 = vpop.xlane.xlu1 %337  ;;  %v1693_v25 = vpop.eup %1692  ;;  %v1161_v26 = vadd.f32 1.0, %v1691_v17  ;;  %1710 = vpow2.f32 %v932_v7  ;;  %v936_v27 = vmul.f32 1.442695, %v793_v1  ;;  %v670_v28 = vadd.f32 %v2559_v34, %v335_v19 }
  0xbd   :  { %v1695_v30 = vpop.eup %1694  ;;  %v1162_v31 = vadd.f32 1.0, %v1693_v25  ;;  %1712 = vpow2.f32 %v934_v12  ;;  %v671_v32 = vadd.f32 %v2559_v34, %v338_v20  ;;  %v938_v36 = vmul.f32 1.442695, %v794_v18 }
  0xbe   :  { %v1697_v35 = vpop.eup %1696  ;;  %1532 = vst.msk [vmem:[%s3445_s3 + $0x30] sm:$0xff] %vm1525_vm1, %v1695_v30  ;;  %1714 = vrcp.f32 %v1161_v26  ;;  %v795_v37 = vsub.f32 0.0, %v670_v28  ;;  %550 = vadd.xlane.f32.xlu0 %v549_v15  ;;  %553 = vadd.xlane.f32.xlu1 %v552_v16  ;;  %v249_v14 = vmul.f32 %v2716_v22, %v117_v2  ;;  %v250_v1 = vmul.f32 %v2716_v22, %v118_v3  ;;  %v119_v26 = vld [vmem:[%s3442_s0 + $0x340] sm:$0xff] }
  0xbf   :  { %1716 = vrcp.f32 %v1162_v31  ;;  %v1163_v40 = vadd.f32 1.0, %v1697_v35  ;;  %v796_v41 = vsub.f32 0.0, %v671_v32  ;;  %v341_v42 = vpop.xlane.xlu0 %340  ;;  %v573_v30 = vsel %vm272_vm0, %v247_v63, 0.0 }
  0xc0   :  { %v344_v43 = vpop.xlane.xlu1 %343  ;;  %v1699_v45 = vpop.eup %1698  ;;  %1718 = vpow2.f32 %v936_v27  ;;  %v940_v46 = vmul.f32 1.442695, %v795_v37  ;;  %v672_v47 = vadd.f32 %v2559_v34, %v341_v42  ;;  %v576_v35 = vsel %vm272_vm0, %v248_v13, 0.0  ;;  %v124_v13 = vld [vmem:[%s3442_s0 + $0x368] sm:$0xff] }
  0xc1   :  { %v673_v48 = vadd.f32 %v2559_v34, %v344_v43  ;;  %v1701_v50 = vpop.eup %1700  ;;  %1533 = vst.msk [vmem:[%s3445_s3 + $0x38] sm:$0xff] %vm1525_vm1, %v1699_v45  ;;  %1720 = vrcp.f32 %v1163_v40  ;;  %v942_v51 = vmul.f32 1.442695, %v796_v41  ;;  %v579_v41 = vsel %vm272_vm0, %v249_v14, 0.0 }
  0xc2   :  { %v1703_v54 = vpop.eup %1702  ;;  %1534 = vst.msk [vmem:[%s3445_s3 + $0x40] sm:$0xff] %vm1525_vm1, %v1701_v50  ;;  %1722 = vpow2.f32 %v938_v36  ;;  %v797_v55 = vsub.f32 0.0, %v672_v47  ;;  %556 = vadd.xlane.f32.xlu0 %v555_v21  ;;  %559 = vadd.xlane.f32.xlu1 %v558_v33  ;;  %v120_v36 = vld [vmem:[%s3442_s0 + $0x348] sm:$0xff]  ;;  %v251_v42 = vmul.f32 %v2716_v22, %v119_v26  ;;  %v121_v47 = vld [vmem:[%s3442_s0 + $0x350] sm:$0xff] }
  0xc3   :  { %v798_v56 = vsub.f32 0.0, %v673_v48  ;;  %v1705_v58 = vpop.eup %1704  ;;  %v1164_v59 = vadd.f32 1.0, %v1703_v54  ;;  %1724 = vpow2.f32 %v940_v46  ;;  %v347_v60 = vpop.xlane.xlu0 %346  ;;  %v582_v46 = vsel %vm272_vm0, %v250_v1, 0.0 }
  0xc4   :  { %v350_v61 = vpop.xlane.xlu1 %349  ;;  %v1707_v4 = vpop.eup %1706  ;;  %v1165_v5 = vadd.f32 1.0, %v1705_v58  ;;  %1726 = vpow2.f32 %v942_v51  ;;  %v944_v6 = vmul.f32 1.442695, %v797_v55  ;;  %v674_v9 = vadd.f32 %v2559_v34, %v347_v60 }
  0xc5   :  { %v946_v7 = vmul.f32 1.442695, %v798_v56  ;;  %v1709_v8 = vpop.eup %1708  ;;  %1535 = vst.msk [vmem:[%s3445_s3 + $0x48] sm:$0xff] %vm1525_vm1, %v1707_v4  ;;  %1728 = vrcp.f32 %v1164_v59  ;;  %v675_v10 = vadd.f32 %v2559_v34, %v350_v61  ;;  %v252_v51 = vmul.f32 %v2716_v22, %v120_v36  ;;  %v122_v56 = vld [vmem:[%s3442_s0 + $0x358] sm:$0xff] }
  0xc6   :  { %v1711_v12 = vpop.eup %1710  ;;  %1536 = vst.msk [vmem:[%s3445_s3 + $0x50] sm:$0xff] %vm1525_vm1, %v1709_v8  ;;  %1730 = vrcp.f32 %v1165_v5  ;;  %562 = vadd.xlane.f32.xlu0 %v561_v52  ;;  %565 = vadd.xlane.f32.xlu1 %v564_v57  ;;  %v799_v17 = vsub.f32 0.0, %v674_v9  ;;  %v123_v8 = vld [vmem:[%s3442_s0 + $0x360] sm:$0xff] }
  0xc7   :  { %v1713_v15 = vpop.eup %1712  ;;  %v1166_v16 = vadd.f32 1.0, %v1711_v12  ;;  %1732 = vpow2.f32 %v944_v6  ;;  %v800_v18 = vsub.f32 0.0, %v675_v10  ;;  %v353_v19 = vpop.xlane.xlu0 %352  ;;  %v585_v6 = vsel %vm272_vm0, %v251_v42, 0.0 }
  0xc8   :  { %v356_v20 = vpop.xlane.xlu1 %355  ;;  %v1715_v21 = vpop.eup %1714  ;;  %v1167_v23 = vadd.f32 1.0, %v1713_v15  ;;  %1734 = vpow2.f32 %v946_v7  ;;  %v676_v24 = vadd.f32 %v2559_v34, %v353_v19  ;;  %v948_v28 = vmul.f32 1.442695, %v799_v17 }
  0xc9   :  { %v677_v25 = vadd.f32 %v2559_v34, %v356_v20  ;;  %v1717_v27 = vpop.eup %1716  ;;  %1537 = vst.msk [vmem:[%s3445_s3 + $0x58] sm:$0xff] %vm1525_vm1, %v1715_v21  ;;  %1736 = vrcp.f32 %v1166_v16  ;;  %v950_v29 = vmul.f32 1.442695, %v800_v18  ;;  %v254_v7 = vmul.f32 %v2716_v22, %v122_v56 }
  0xca   :  { %v1719_v31 = vpop.eup %1718  ;;  %1538 = vst.msk [vmem:[%s3445_s3 + $0x60] sm:$0xff] %vm1525_vm1, %v1717_v27  ;;  %1738 = vrcp.f32 %v1167_v23  ;;  %v801_v32 = vsub.f32 0.0, %v676_v24  ;;  %568 = vadd.xlane.f32.xlu0 %v567_v62  ;;  %571 = vadd.xlane.f32.xlu1 %v570_v11  ;;  %v253_v62 = vmul.f32 %v2716_v22, %v121_v47  ;;  %v588_v17 = vsel %vm272_vm0, %v252_v51, 0.0  ;;  %v125_v24 = vld [vmem:[%s3442_s0 + $0x370] sm:$0xff] }
  0xcb   :  { %v802_v33 = vsub.f32 0.0, %v677_v25  ;;  %v1721_v37 = vpop.eup %1720  ;;  %v1168_v38 = vadd.f32 1.0, %v1719_v31  ;;  %1740 = vpow2.f32 %v948_v28  ;;  %v359_v39 = vpop.xlane.xlu0 %358  ;;  %v255_v23 = vmul.f32 %v2716_v22, %v123_v8 }
  0xcc   :  { %v362_v40 = vpop.xlane.xlu1 %361  ;;  %v1723_v43 = vpop.eup %1722  ;;  %1539 = vst.msk [vmem:[%s3445_s3 + $0x68] sm:$0xff] %vm1525_vm1, %v1721_v37  ;;  %1742 = vpow2.f32 %v950_v29  ;;  %v952_v44 = vmul.f32 1.442695, %v801_v32  ;;  %v678_v45 = vadd.f32 %v2559_v34, %v359_v39  ;;  %v591_v18 = vsel %vm272_vm0, %v253_v62, 0.0 }
  0xcd   :  { %v1725_v48 = vpop.eup %1724  ;;  %1744 = vrcp.f32 %v1168_v38  ;;  %v1169_v49 = vadd.f32 1.0, %v1723_v43  ;;  %v679_v50 = vadd.f32 %v2559_v34, %v362_v40  ;;  %v954_v54 = vmul.f32 1.442695, %v802_v33  ;;  %v126_v40 = vld [vmem:[%s3442_s0 + $0x378] sm:$0xff] }
  0xce   :  { %v1727_v52 = vpop.eup %1726  ;;  %v1170_v53 = vadd.f32 1.0, %v1725_v48  ;;  %1746 = vpow2.f32 %v952_v44  ;;  %v803_v55 = vsub.f32 0.0, %v678_v45  ;;  %574 = vadd.xlane.f32.xlu0 %v573_v30  ;;  %577 = vadd.xlane.f32.xlu1 %v576_v35  ;;  %v594_v27 = vsel %vm272_vm0, %v254_v7, 0.0  ;;  %v127_v48 = vld [vmem:[%s3442_s0 + $0x380] sm:$0xff] }
  0xcf   :  { %v1729_v57 = vpop.eup %1728  ;;  %1748 = vrcp.f32 %v1169_v49  ;;  %v1171_v58 = vadd.f32 1.0, %v1727_v52  ;;  %v804_v59 = vsub.f32 0.0, %v679_v50  ;;  %v365_v60 = vpop.xlane.xlu0 %364  ;;  %v256_v28 = vmul.f32 %v2716_v22, %v124_v13 }
  0xd0   :  { %v368_v61 = vpop.xlane.xlu1 %367  ;;  %v1731_v63 = vpop.eup %1730  ;;  %1540 = vst.msk [vmem:[%s3445_s3 + $0x70] sm:$0xff] %vm1525_vm1, %v1729_v57  ;;  %1750 = vrcp.f32 %v1170_v53  ;;  %v956_v0 = vmul.f32 1.442695, %v803_v55  ;;  %v680_v2 = vadd.f32 %v2559_v34, %v365_v60  ;;  %v257_v39 = vmul.f32 %v2716_v22, %v125_v24 }
  0xd1   :  { %v681_v3 = vadd.f32 %v2559_v34, %v368_v61  ;;  %v1733_v4 = vpop.eup %1732  ;;  %1541 = vst.msk [vmem:[%s3445_s3 + $0x78] sm:$0xff] %vm1525_vm1, %v1731_v63  ;;  %1752 = vrcp.f32 %v1171_v58  ;;  %v958_v5 = vmul.f32 1.442695, %v804_v59  ;;  %v258_v52 = vmul.f32 %v2716_v22, %v126_v40  ;;  %v128_v63 = vld [vmem:[%s3442_s0 + $0x388] sm:$0xff] }
  0xd2   :  { %v1735_v9 = vpop.eup %1734  ;;  %v1172_v10 = vadd.f32 1.0, %v1733_v4  ;;  %1754 = vpow2.f32 %v954_v54  ;;  %v805_v11 = vsub.f32 0.0, %v680_v2  ;;  %580 = vadd.xlane.f32.xlu0 %v579_v41  ;;  %583 = vadd.xlane.f32.xlu1 %v582_v46  ;;  %v597_v55 = vsel %vm272_vm0, %v255_v23, 0.0 }
  0xd3   :  { %v806_v12 = vsub.f32 0.0, %v681_v3  ;;  %v1737_v14 = vpop.eup %1736  ;;  %v1173_v1 = vadd.f32 1.0, %v1735_v9  ;;  %1756 = vpow2.f32 %v956_v0  ;;  %v371_v15 = vpop.xlane.xlu0 %370  ;;  %v600_v57 = vsel %vm272_vm0, %v256_v28, 0.0  ;;  %v129_v0 = vld [vmem:[%s3442_s0 + $0x390] sm:$0xff] }
  0xd4   :  { %v374_v16 = vpop.xlane.xlu1 %373  ;;  %v1739_v19 = vpop.eup %1738  ;;  %1542 = vst.msk [vmem:[%s3445_s3 + $0x80] sm:$0xff] %vm1525_vm1, %v1737_v14  ;;  %1758 = vrcp.f32 %v1172_v10  ;;  %v960_v20 = vmul.f32 1.442695, %v805_v11  ;;  %v682_v21 = vadd.f32 %v2559_v34, %v371_v15  ;;  %v603_v58 = vsel %vm272_vm0, %v257_v39, 0.0  ;;  %v130_v10 = vld [vmem:[%s3442_s0 + $0x398] sm:$0xff] }
  0xd5   :  { %v1741_v25 = vpop.eup %1740  ;;  %1543 = vst.msk [vmem:[%s3445_s3 + $0x88] sm:$0xff] %vm1525_vm1, %v1739_v19  ;;  %1760 = vrcp.f32 %v1173_v1  ;;  %v683_v26 = vadd.f32 %v2559_v34, %v374_v16  ;;  %v962_v31 = vmul.f32 1.442695, %v806_v12  ;;  %v259_v62 = vmul.f32 %v2716_v22, %v127_v48 }
  0xd6   :  { %v1743_v29 = vpop.eup %1742  ;;  %v1174_v30 = vadd.f32 1.0, %v1741_v25  ;;  %1762 = vpow2.f32 %v958_v5  ;;  %v807_v32 = vsub.f32 0.0, %v682_v21  ;;  %586 = vadd.xlane.f32.xlu0 %v585_v6  ;;  %589 = vadd.xlane.f32.xlu1 %v588_v17  ;;  %v606_v9 = vsel %vm272_vm0, %v258_v52, 0.0 }
  0xd7   :  { %v1745_v33 = vpop.eup %1744  ;;  %v1175_v35 = vadd.f32 1.0, %v1743_v29  ;;  %1764 = vpow2.f32 %v960_v20  ;;  %v808_v36 = vsub.f32 0.0, %v683_v26  ;;  %v377_v37 = vpop.xlane.xlu0 %376  ;;  %v260_v1 = vmul.f32 %v2716_v22, %v128_v63  ;;  %v131_v20 = vld [vmem:[%s3442_s0 + $0x3a0] sm:$0xff] }
  0xd8   :  { %v380_v38 = vpop.xlane.xlu1 %379  ;;  %v1747_v41 = vpop.eup %1746  ;;  %1544 = vst.msk [vmem:[%s3445_s3 + $0x90] sm:$0xff] %vm1525_vm1, %v1745_v33  ;;  %1766 = vrcp.f32 %v1174_v30  ;;  %v964_v42 = vmul.f32 1.442695, %v807_v32  ;;  %v684_v43 = vadd.f32 %v2559_v34, %v377_v37  ;;  %v261_v15 = vmul.f32 %v2716_v22, %v129_v0  ;;  %v132_v37 = vld [vmem:[%s3442_s0 + $0x3a8] sm:$0xff] }
  0xd9   :  { %v685_v44 = vadd.f32 %v2559_v34, %v380_v38  ;;  %v1749_v45 = vpop.eup %1748  ;;  %1768 = vrcp.f32 %v1175_v35  ;;  %v1176_v46 = vadd.f32 1.0, %v1747_v41  ;;  %v966_v47 = vmul.f32 1.442695, %v808_v36 }
  0xda   :  { %v1751_v49 = vpop.eup %1750  ;;  %1545 = vst.msk [vmem:[%s3445_s3 + $0x98] sm:$0xff] %vm1525_vm1, %v1749_v45  ;;  %1770 = vpow2.f32 %v962_v31  ;;  %v809_v50 = vsub.f32 0.0, %v684_v43  ;;  %592 = vadd.xlane.f32.xlu0 %v591_v18  ;;  %595 = vadd.xlane.f32.xlu1 %v594_v27  ;;  %v262_v25 = vmul.f32 %v2716_v22, %v130_v10  ;;  %v609_v32 = vsel %vm272_vm0, %v259_v62, 0.0  ;;  %v135_v62 = vld [vmem:[%s3442_s0 + $0x3c0] sm:$0xff] }
  0xdb   :  { %v810_v51 = vsub.f32 0.0, %v685_v44  ;;  %v1753_v53 = vpop.eup %1752  ;;  %1546 = vst.msk [vmem:[%s3445_s3 + $0xa0] sm:$0xff] %vm1525_vm1, %v1751_v49  ;;  %1772 = vrcp.f32 %v1176_v46  ;;  %v383_v54 = vpop.xlane.xlu0 %382  ;;  %v612_v35 = vsel %vm272_vm0, %v260_v1, 0.0  ;;  %v263_v36 = vmul.f32 %v2716_v22, %v131_v20 }
  0xdc   :  { %v386_v56 = vpop.xlane.xlu1 %385  ;;  %v1755_v59 = vpop.eup %1754  ;;  %1547 = vst.msk [vmem:[%s3445_s3 + $0xa8] sm:$0xff] %vm1525_vm1, %v1753_v53  ;;  %1774 = vpow2.f32 %v964_v42  ;;  %v968_v60 = vmul.f32 1.442695, %v809_v50  ;;  %v686_v61 = vadd.f32 %v2559_v34, %v383_v54  ;;  %v615_v45 = vsel %vm272_vm0, %v261_v15, 0.0 }
  0xdd   :  { %v1757_v2 = vpop.eup %1756  ;;  %v1177_v3 = vadd.f32 1.0, %v1755_v59  ;;  %1776 = vpow2.f32 %v966_v47  ;;  %v970_v4 = vmul.f32 1.442695, %v810_v51  ;;  %v687_v5 = vadd.f32 %v2559_v34, %v386_v56  ;;  %v133_v56 = vld [vmem:[%s3442_s0 + $0x3b0] sm:$0xff] }
  0xde   :  { %v1759_v6 = vpop.eup %1758  ;;  %v1178_v7 = vadd.f32 1.0, %v1757_v2  ;;  %1778 = vpow2.f32 %v968_v60  ;;  %v811_v8 = vsub.f32 0.0, %v686_v61  ;;  %598 = vadd.xlane.f32.xlu0 %v597_v55  ;;  %601 = vadd.xlane.f32.xlu1 %v600_v57  ;;  %v618_v48 = vsel %vm272_vm0, %v262_v25, 0.0  ;;  %v134_v61 = vld [vmem:[%s3442_s0 + $0x3b8] sm:$0xff] }
  0xdf   :  { %v1761_v11 = vpop.eup %1760  ;;  %1548 = vst.msk [vmem:[%s3445_s3 + $0xb0] sm:$0xff] %vm1525_vm1, %v1759_v6  ;;  %1780 = vrcp.f32 %v1177_v3  ;;  %v812_v12 = vsub.f32 0.0, %v687_v5  ;;  %v389_v13 = vpop.xlane.xlu0 %388  ;;  %v264_v49 = vmul.f32 %v2716_v22, %v132_v37  ;;  %v621_v55 = vsel %vm272_vm0, %v263_v36, 0.0 }
  0xe0   :  { %v392_v14 = vpop.xlane.xlu1 %391  ;;  %v1763_v16 = vpop.eup %1762  ;;  %1549 = vst.msk [vmem:[%s3445_s3 + $0xb8] sm:$0xff] %vm1525_vm1, %v1761_v11  ;;  %1782 = vrcp.f32 %v1178_v7  ;;  %v972_v17 = vmul.f32 1.442695, %v811_v8  ;;  %v688_v18 = vadd.f32 %v2559_v34, %v389_v13  ;;  %v265_v7 = vmul.f32 %v2716_v22, %v133_v56 }
  0xe1   :  { %v689_v19 = vadd.f32 %v2559_v34, %v392_v14  ;;  %v1765_v21 = vpop.eup %1764  ;;  %v1179_v23 = vadd.f32 1.0, %v1763_v16  ;;  %1784 = vpow2.f32 %v970_v4  ;;  %v974_v24 = vmul.f32 1.442695, %v812_v12  ;;  %v136_v14 = vld [vmem:[%s3442_s0 + $0x3c8] sm:$0xff] }
  0xe2   :  { %v1767_v26 = vpop.eup %1766  ;;  %v1180_v27 = vadd.f32 1.0, %v1765_v21  ;;  %1786 = vpow2.f32 %v972_v17  ;;  %v813_v28 = vsub.f32 0.0, %v688_v18  ;;  %604 = vadd.xlane.f32.xlu0 %v603_v58  ;;  %607 = vadd.xlane.f32.xlu1 %v606_v9  ;;  %v624_v6 = vsel %vm272_vm0, %v264_v49, 0.0 }
  0xe3   :  { %v814_v29 = vsub.f32 0.0, %v689_v19  ;;  %v1769_v30 = vpop.eup %1768  ;;  %1550 = vst.msk [vmem:[%s3445_s3 + $0xc0] sm:$0xff] %vm1525_vm1, %v1767_v26  ;;  %1788 = vrcp.f32 %v1179_v23  ;;  %v395_v31 = vpop.xlane.xlu0 %394  ;;  %v266_v12 = vmul.f32 %v2716_v22, %v134_v61  ;;  %v267_v13 = vmul.f32 %v2716_v22, %v135_v62 }
  0xe4   :  { %v398_v33 = vpop.xlane.xlu1 %397  ;;  %v1771_v38 = vpop.eup %1770  ;;  %1551 = vst.msk [vmem:[%s3445_s3 + $0xc8] sm:$0xff] %vm1525_vm1, %v1769_v30  ;;  %1790 = vrcp.f32 %v1180_v27  ;;  %v976_v39 = vmul.f32 1.442695, %v813_v28  ;;  %v690_v41 = vadd.f32 %v2559_v34, %v395_v31  ;;  %v627_v25 = vsel %vm272_vm0, %v265_v7, 0.0  ;;  %v137_v27 = vld [vmem:[%s3442_s0 + $0x3d0] sm:$0xff] }
  0xe5   :  { %v978_v40 = vmul.f32 1.442695, %v814_v29  ;;  %v1773_v42 = vpop.eup %1772  ;;  %v1181_v43 = vadd.f32 1.0, %v1771_v38  ;;  %1792 = vpow2.f32 %v974_v24  ;;  %v691_v44 = vadd.f32 %v2559_v34, %v398_v33 }
  0xe6   :  { %v1775_v46 = vpop.eup %1774  ;;  %1552 = vst.msk [vmem:[%s3445_s3 + $0xd0] sm:$0xff] %vm1525_vm1, %v1773_v42  ;;  %1794 = vpow2.f32 %v976_v39  ;;  %v815_v47 = vsub.f32 0.0, %v690_v41  ;;  %610 = vadd.xlane.f32.xlu0 %v609_v32  ;;  %613 = vadd.xlane.f32.xlu1 %v612_v35  ;;  %v268_v26 = vmul.f32 %v2716_v22, %v136_v14  ;;  %v630_v32 = vsel %vm272_vm0, %v266_v12, 0.0  ;;  %v138_v39 = vld [vmem:[%s3442_s0 + $0x3d8] sm:$0xff] }
  0xe7   :  { %v1777_v50 = vpop.eup %1776  ;;  %1796 = vrcp.f32 %v1181_v43  ;;  %v1182_v51 = vadd.f32 1.0, %v1775_v46  ;;  %v816_v52 = vsub.f32 0.0, %v691_v44  ;;  %v401_v53 = vpop.xlane.xlu0 %400  ;;  %v633_v33 = vsel %vm272_vm0, %v267_v13, 0.0 }
  0xe8   :  { %v404_v54 = vpop.xlane.xlu1 %403  ;;  %v1779_v57 = vpop.eup %1778  ;;  %v1183_v58 = vadd.f32 1.0, %v1777_v50  ;;  %1798 = vpow2.f32 %v978_v40  ;;  %v980_v59 = vmul.f32 1.442695, %v815_v47  ;;  %v692_v60 = vadd.f32 %v2559_v34, %v401_v53 }
  0xe9   :  { %v1781_v63 = vpop.eup %1780  ;;  %1800 = vrcp.f32 %v1182_v51  ;;  %v1184_v0 = vadd.f32 1.0, %v1779_v57  ;;  %v982_v2 = vmul.f32 1.442695, %v816_v52  ;;  %v693_v3 = vadd.f32 %v2559_v34, %v404_v54  ;;  %v139_v54 = vld [vmem:[%s3442_s0 + $0x3e0] sm:$0xff] }
  0xea   :  { %v1783_v4 = vpop.eup %1782  ;;  %1553 = vst.msk [vmem:[%s3445_s3 + $0xd8] sm:$0xff] %vm1525_vm1, %v1781_v63  ;;  %1802 = vrcp.f32 %v1183_v58  ;;  %v817_v5 = vsub.f32 0.0, %v692_v60  ;;  %616 = vadd.xlane.f32.xlu0 %v615_v45  ;;  %619 = vadd.xlane.f32.xlu1 %v618_v48  ;;  %v269_v43 = vmul.f32 %v2716_v22, %v137_v27  ;;  %v636_v47 = vsel %vm272_vm0, %v268_v26, 0.0 }
  0xeb   :  { %v1785_v8 = vpop.eup %1784  ;;  %1554 = vst.msk [vmem:[%s3445_s3 + $0xe0] sm:$0xff] %vm1525_vm1, %v1783_v4  ;;  %1804 = vrcp.f32 %v1184_v0  ;;  %v818_v9 = vsub.f32 0.0, %v693_v3  ;;  %v407_v10 = vpop.xlane.xlu0 %406  ;;  %v270_v53 = vmul.f32 %v2716_v22, %v138_v39  ;;  %v271_v0 = vmul.f32 %v2716_v22, %v139_v54 }
  0xec   :  { %v410_v11 = vpop.xlane.xlu1 %409  ;;  %v1787_v1 = vpop.eup %1786  ;;  %v1185_v15 = vadd.f32 1.0, %v1785_v8  ;;  %1806 = vpow2.f32 %v980_v59  ;;  %v984_v16 = vmul.f32 1.442695, %v817_v5  ;;  %v694_v17 = vadd.f32 %v2559_v34, %v407_v10 }
  0xed   :  { %v1789_v18 = vpop.eup %1788  ;;  %v1186_v19 = vadd.f32 1.0, %v1787_v1  ;;  %1808 = vpow2.f32 %v982_v2  ;;  %v986_v20 = vmul.f32 1.442695, %v818_v9  ;;  %v695_v21 = vadd.f32 %v2559_v34, %v410_v11 }
  0xee   :  { %v1791_v23 = vpop.eup %1790  ;;  %1555 = vst.msk [vmem:[%s3445_s3 + $0xe8] sm:$0xff] %vm1525_vm1, %v1789_v18  ;;  %1810 = vrcp.f32 %v1185_v15  ;;  %v819_v24 = vsub.f32 0.0, %v694_v17  ;;  %622 = vadd.xlane.f32.xlu0 %v621_v55  ;;  %625 = vadd.xlane.f32.xlu1 %v624_v6  ;;  %v639_v5 = vsel %vm272_vm0, %v269_v43, 0.0  ;;  %v642_v7 = vsel %vm272_vm0, %v270_v53, 0.0 }
  0xef   :  { %v1793_v28 = vpop.eup %1792  ;;  %1556 = vst.msk [vmem:[%s3445_s3 + $0xf0] sm:$0xff] %vm1525_vm1, %v1791_v23  ;;  %1812 = vrcp.f32 %v1186_v19  ;;  %v820_v29 = vsub.f32 0.0, %v695_v21  ;;  %v413_v30 = vpop.xlane.xlu0 %412  ;;  %v645_v1 = vsel %vm272_vm0, %v271_v0, 0.0 }
  0xf0   :  { %v416_v31 = vpop.xlane.xlu1 %415  ;;  %v1795_v35 = vpop.eup %1794  ;;  %v1187_v36 = vadd.f32 1.0, %v1793_v28  ;;  %1814 = vpow2.f32 %v984_v16  ;;  %v988_v37 = vmul.f32 1.442695, %v819_v24  ;;  %v696_v38 = vadd.f32 %v2559_v34, %v413_v30 }
  0xf1   :  { %v1797_v40 = vpop.eup %1796  ;;  %v1188_v41 = vadd.f32 1.0, %v1795_v35  ;;  %1816 = vpow2.f32 %v986_v20  ;;  %v697_v42 = vadd.f32 %v2559_v34, %v416_v31  ;;  %v990_v45 = vmul.f32 1.442695, %v820_v29 }
  0xf2   :  { %v1799_v44 = vpop.eup %1798  ;;  %1557 = vst.msk [vmem:[%s3445_s3 + $0xf8] sm:$0xff] %vm1525_vm1, %v1797_v40  ;;  %1818 = vrcp.f32 %v1187_v36  ;;  %v821_v46 = vsub.f32 0.0, %v696_v38  ;;  %628 = vadd.xlane.f32.xlu0 %v627_v25  ;;  %631 = vadd.xlane.f32.xlu1 %v630_v32 }
  0xf3   :  { %v1801_v48 = vpop.eup %1800  ;;  %1820 = vrcp.f32 %v1188_v41  ;;  %v1189_v49 = vadd.f32 1.0, %v1799_v44  ;;  %v822_v50 = vsub.f32 0.0, %v697_v42  ;;  %v419_v51 = vpop.xlane.xlu0 %418 }
  0xf4   :  { %v422_v52 = vpop.xlane.xlu1 %421  ;;  %v1803_v55 = vpop.eup %1802  ;;  %1558 = vst.msk [vmem:[%s3445_s3 + $0x100] sm:$0xff] %vm1525_vm1, %v1801_v48  ;;  %1822 = vpow2.f32 %v988_v37  ;;  %v992_v56 = vmul.f32 1.442695, %v821_v46  ;;  %v698_v57 = vadd.f32 %v2559_v34, %v419_v51 }
  0xf5   :  { %v699_v58 = vadd.f32 %v2559_v34, %v422_v52  ;;  %v1805_v59 = vpop.eup %1804  ;;  %1559 = vst.msk [vmem:[%s3445_s3 + $0x108] sm:$0xff] %vm1525_vm1, %v1803_v55  ;;  %1824 = vrcp.f32 %v1189_v49  ;;  %v994_v60 = vmul.f32 1.442695, %v822_v50 }
  0xf6   :  { %v1807_v61 = vpop.eup %1806  ;;  %1560 = vst.msk [vmem:[%s3445_s3 + $0x110] sm:$0xff] %vm1525_vm1, %v1805_v59  ;;  %1826 = vpow2.f32 %v990_v45  ;;  %v823_v62 = vsub.f32 0.0, %v698_v57  ;;  %634 = vadd.xlane.f32.xlu0 %v633_v33  ;;  %637 = vadd.xlane.f32.xlu1 %v636_v47 }
  0xf7   :  { %v824_v63 = vsub.f32 0.0, %v699_v58  ;;  %v1809_v2 = vpop.eup %1808  ;;  %v1190_v3 = vadd.f32 1.0, %v1807_v61  ;;  %1828 = vpow2.f32 %v992_v56  ;;  %v425_v4 = vpop.xlane.xlu0 %424 }
  0xf8   :  { %v428_v6 = vpop.xlane.xlu1 %427  ;;  %v1811_v8 = vpop.eup %1810  ;;  %v1191_v9 = vadd.f32 1.0, %v1809_v2  ;;  %1830 = vpow2.f32 %v994_v60  ;;  %v996_v10 = vmul.f32 1.442695, %v823_v62  ;;  %v700_v22 = vadd.f32 %v2559_v34, %v425_v4 }
  0xf9   :  { %v998_v11 = vmul.f32 1.442695, %v824_v63  ;;  %v1813_v12 = vpop.eup %1812  ;;  %1561 = vst.msk [vmem:[%s3445_s3 + $0x118] sm:$0xff] %vm1525_vm1, %v1811_v8  ;;  %1832 = vrcp.f32 %v1190_v3  ;;  %v701_v13 = vadd.f32 %v2559_v34, %v428_v6 }
  0xfa   :  { %v1815_v14 = vpop.eup %1814  ;;  %1562 = vst.msk [vmem:[%s3445_s3 + $0x120] sm:$0xff] %vm1525_vm1, %v1813_v12  ;;  %1834 = vrcp.f32 %v1191_v9  ;;  %640 = vadd.xlane.f32.xlu0 %v639_v5  ;;  %643 = vadd.xlane.f32.xlu1 %v642_v7  ;;  %v825_v17 = vsub.f32 0.0, %v700_v22 }
  0xfb   :  { %v1817_v15 = vpop.eup %1816  ;;  %v1192_v16 = vadd.f32 1.0, %v1815_v14  ;;  %1836 = vpow2.f32 %v996_v10  ;;  %v826_v18 = vsub.f32 0.0, %v701_v13  ;;  %v431_v19 = vpop.xlane.xlu0 %430 }
  0xfc   :  { %v434_v20 = vpop.xlane.xlu1 %433  ;;  %v1819_v21 = vpop.eup %1818  ;;  %v1193_v23 = vadd.f32 1.0, %v1817_v15  ;;  %1838 = vpow2.f32 %v998_v11  ;;  %v702_v24 = vadd.f32 %v2559_v34, %v431_v19  ;;  %v1000_v27 = vmul.f32 1.442695, %v825_v17 }
  0xfd   :  { %v703_v25 = vadd.f32 %v2559_v34, %v434_v20  ;;  %v1821_v26 = vpop.eup %1820  ;;  %1563 = vst.msk [vmem:[%s3445_s3 + $0x128] sm:$0xff] %vm1525_vm1, %v1819_v21  ;;  %1840 = vrcp.f32 %v1192_v16  ;;  %v1002_v28 = vmul.f32 1.442695, %v826_v18 }
  0xfe   :  { %v1823_v29 = vpop.eup %1822  ;;  %1564 = vst.msk [vmem:[%s3445_s3 + $0x130] sm:$0xff] %vm1525_vm1, %v1821_v26  ;;  %1842 = vrcp.f32 %v1193_v23  ;;  %v827_v30 = vsub.f32 0.0, %v702_v24  ;;  %646 = vadd.xlane.f32.xlu0 %v645_v1 }
  0xff   :  { %v828_v31 = vsub.f32 0.0, %v703_v25  ;;  %v1825_v32 = vpop.eup %1824  ;;  %v1194_v33 = vadd.f32 1.0, %v1823_v29  ;;  %1844 = vpow2.f32 %v1000_v27  ;;  %v437_v35 = vpop.xlane.xlu0 %436 }
 0x100   :  { %v440_v36 = vpop.xlane.xlu1 %439  ;;  %v1827_v37 = vpop.eup %1826  ;;  %1565 = vst.msk [vmem:[%s3445_s3 + $0x138] sm:$0xff] %vm1525_vm1, %v1825_v32  ;;  %1846 = vpow2.f32 %v1002_v28  ;;  %v1004_v38 = vmul.f32 1.442695, %v827_v30  ;;  %v704_v39 = vadd.f32 %v2559_v34, %v437_v35 }
 0x101   :  { %v1829_v40 = vpop.eup %1828  ;;  %1848 = vrcp.f32 %v1194_v33  ;;  %v1195_v41 = vadd.f32 1.0, %v1827_v37  ;;  %v705_v42 = vadd.f32 %v2559_v34, %v440_v36  ;;  %v1006_v45 = vmul.f32 1.442695, %v828_v31 }
 0x102   :  { %v1831_v43 = vpop.eup %1830  ;;  %v1196_v44 = vadd.f32 1.0, %v1829_v40  ;;  %1850 = vpow2.f32 %v1004_v38  ;;  %v829_v46 = vsub.f32 0.0, %v704_v39 }
 0x103   :  { %v1833_v47 = vpop.eup %1832  ;;  %1852 = vrcp.f32 %v1195_v41  ;;  %v1197_v48 = vadd.f32 1.0, %v1831_v43  ;;  %v830_v49 = vsub.f32 0.0, %v705_v42  ;;  %v443_v50 = vpop.xlane.xlu0 %442 }
 0x104   :  { %v446_v51 = vpop.xlane.xlu1 %445  ;;  %v1835_v52 = vpop.eup %1834  ;;  %1566 = vst.msk [vmem:[%s3445_s3 + $0x140] sm:$0xff] %vm1525_vm1, %v1833_v47  ;;  %1854 = vrcp.f32 %v1196_v44  ;;  %v1008_v53 = vmul.f32 1.442695, %v829_v46  ;;  %v706_v54 = vadd.f32 %v2559_v34, %v443_v50 }
 0x105   :  { %v707_v55 = vadd.f32 %v2559_v34, %v446_v51  ;;  %v1837_v56 = vpop.eup %1836  ;;  %1567 = vst.msk [vmem:[%s3445_s3 + $0x148] sm:$0xff] %vm1525_vm1, %v1835_v52  ;;  %1856 = vrcp.f32 %v1197_v48  ;;  %v1010_v57 = vmul.f32 1.442695, %v830_v49 }
 0x106   :  { %v1839_v58 = vpop.eup %1838  ;;  %v1198_v59 = vadd.f32 1.0, %v1837_v56  ;;  %1858 = vpow2.f32 %v1006_v45  ;;  %v831_v60 = vsub.f32 0.0, %v706_v54 }
 0x107   :  { %v832_v61 = vsub.f32 0.0, %v707_v55  ;;  %v1841_v62 = vpop.eup %1840  ;;  %v1199_v63 = vadd.f32 1.0, %v1839_v58  ;;  %1860 = vpow2.f32 %v1008_v53  ;;  %v449_v0 = vpop.xlane.xlu0 %448 }
 0x108   :  { %v452_v2 = vpop.xlane.xlu1 %451  ;;  %v1843_v3 = vpop.eup %1842  ;;  %1568 = vst.msk [vmem:[%s3445_s3 + $0x150] sm:$0xff] %vm1525_vm1, %v1841_v62  ;;  %1862 = vrcp.f32 %v1198_v59  ;;  %v1012_v4 = vmul.f32 1.442695, %v831_v60  ;;  %v708_v5 = vadd.f32 %v2559_v34, %v449_v0 }
 0x109   :  { %v1845_v6 = vpop.eup %1844  ;;  %1569 = vst.msk [vmem:[%s3445_s3 + $0x158] sm:$0xff] %vm1525_vm1, %v1843_v3  ;;  %1864 = vrcp.f32 %v1199_v63  ;;  %v709_v7 = vadd.f32 %v2559_v34, %v452_v2  ;;  %v1014_v10 = vmul.f32 1.442695, %v832_v61 }
 0x10a   :  { %v1847_v8 = vpop.eup %1846  ;;  %v1200_v9 = vadd.f32 1.0, %v1845_v6  ;;  %1866 = vpow2.f32 %v1010_v57  ;;  %v833_v11 = vsub.f32 0.0, %v708_v5 }
 0x10b   :  { %v1849_v12 = vpop.eup %1848  ;;  %v1201_v22 = vadd.f32 1.0, %v1847_v8  ;;  %1868 = vpow2.f32 %v1012_v4  ;;  %v834_v13 = vsub.f32 0.0, %v709_v7  ;;  %v455_v14 = vpop.xlane.xlu0 %454 }
 0x10c   :  { %v458_v1 = vpop.xlane.xlu1 %457  ;;  %v1851_v15 = vpop.eup %1850  ;;  %1570 = vst.msk [vmem:[%s3445_s3 + $0x160] sm:$0xff] %vm1525_vm1, %v1849_v12  ;;  %1870 = vrcp.f32 %v1200_v9  ;;  %v1016_v16 = vmul.f32 1.442695, %v833_v11  ;;  %v710_v17 = vadd.f32 %v2559_v34, %v455_v14 }
 0x10d   :  { %v711_v18 = vadd.f32 %v2559_v34, %v458_v1  ;;  %v1853_v19 = vpop.eup %1852  ;;  %1872 = vrcp.f32 %v1201_v22  ;;  %v1202_v20 = vadd.f32 1.0, %v1851_v15  ;;  %v1018_v21 = vmul.f32 1.442695, %v834_v13 }
 0x10e   :  { %v1855_v23 = vpop.eup %1854  ;;  %1571 = vst.msk [vmem:[%s3445_s3 + $0x168] sm:$0xff] %vm1525_vm1, %v1853_v19  ;;  %1874 = vpow2.f32 %v1014_v10  ;;  %v835_v24 = vsub.f32 0.0, %v710_v17 }
 0x10f   :  { %v836_v25 = vsub.f32 0.0, %v711_v18  ;;  %v1857_v26 = vpop.eup %1856  ;;  %1572 = vst.msk [vmem:[%s3445_s3 + $0x170] sm:$0xff] %vm1525_vm1, %v1855_v23  ;;  %1876 = vrcp.f32 %v1202_v20  ;;  %v461_v27 = vpop.xlane.xlu0 %460 }
 0x110   :  { %v464_v28 = vpop.xlane.xlu1 %463  ;;  %v1859_v29 = vpop.eup %1858  ;;  %1573 = vst.msk [vmem:[%s3445_s3 + $0x178] sm:$0xff] %vm1525_vm1, %v1857_v26  ;;  %1878 = vpow2.f32 %v1016_v16  ;;  %v1020_v30 = vmul.f32 1.442695, %v835_v24  ;;  %v712_v31 = vadd.f32 %v2559_v34, %v461_v27 }
 0x111   :  { %v1861_v32 = vpop.eup %1860  ;;  %v1203_v33 = vadd.f32 1.0, %v1859_v29  ;;  %1880 = vpow2.f32 %v1018_v21  ;;  %v1022_v35 = vmul.f32 1.442695, %v836_v25  ;;  %v713_v36 = vadd.f32 %v2559_v34, %v464_v28 }
 0x112   :  { %v1863_v37 = vpop.eup %1862  ;;  %v1204_v38 = vadd.f32 1.0, %v1861_v32  ;;  %1882 = vpow2.f32 %v1020_v30  ;;  %v837_v39 = vsub.f32 0.0, %v712_v31 }
 0x113   :  { %v1865_v40 = vpop.eup %1864  ;;  %1574 = vst.msk [vmem:[%s3445_s3 + $0x180] sm:$0xff] %vm1525_vm1, %v1863_v37  ;;  %1884 = vrcp.f32 %v1203_v33  ;;  %v838_v41 = vsub.f32 0.0, %v713_v36  ;;  %v467_v42 = vpop.xlane.xlu0 %466 }
 0x114   :  { %v470_v43 = vpop.xlane.xlu1 %469  ;;  %v1867_v44 = vpop.eup %1866  ;;  %1575 = vst.msk [vmem:[%s3445_s3 + $0x188] sm:$0xff] %vm1525_vm1, %v1865_v40  ;;  %1886 = vrcp.f32 %v1204_v38  ;;  %v1024_v45 = vmul.f32 1.442695, %v837_v39  ;;  %v714_v46 = vadd.f32 %v2559_v34, %v467_v42 }
 0x115   :  { %v715_v47 = vadd.f32 %v2559_v34, %v470_v43  ;;  %v1869_v48 = vpop.eup %1868  ;;  %v1205_v49 = vadd.f32 1.0, %v1867_v44  ;;  %1888 = vpow2.f32 %v1022_v35  ;;  %v1026_v50 = vmul.f32 1.442695, %v838_v41 }
 0x116   :  { %v1871_v51 = vpop.eup %1870  ;;  %v1206_v52 = vadd.f32 1.0, %v1869_v48  ;;  %1890 = vpow2.f32 %v1024_v45  ;;  %v839_v53 = vsub.f32 0.0, %v714_v46 }
 0x117   :  { %v840_v54 = vsub.f32 0.0, %v715_v47  ;;  %v1873_v55 = vpop.eup %1872  ;;  %1576 = vst.msk [vmem:[%s3445_s3 + $0x190] sm:$0xff] %vm1525_vm1, %v1871_v51  ;;  %1892 = vrcp.f32 %v1205_v49  ;;  %v473_v56 = vpop.xlane.xlu0 %472 }
 0x118   :  { %v476_v57 = vpop.xlane.xlu1 %475  ;;  %v1875_v58 = vpop.eup %1874  ;;  %1577 = vst.msk [vmem:[%s3445_s3 + $0x198] sm:$0xff] %vm1525_vm1, %v1873_v55  ;;  %1894 = vrcp.f32 %v1206_v52  ;;  %v1028_v59 = vmul.f32 1.442695, %v839_v53  ;;  %v716_v61 = vadd.f32 %v2559_v34, %v473_v56 }
 0x119   :  { %v1030_v60 = vmul.f32 1.442695, %v840_v54  ;;  %v1877_v62 = vpop.eup %1876  ;;  %v1207_v63 = vadd.f32 1.0, %v1875_v58  ;;  %1896 = vpow2.f32 %v1026_v50  ;;  %v717_v0 = vadd.f32 %v2559_v34, %v476_v57 }
 0x11a   :  { %v1879_v2 = vpop.eup %1878  ;;  %1578 = vst.msk [vmem:[%s3445_s3 + $0x1a0] sm:$0xff] %vm1525_vm1, %v1877_v62  ;;  %1898 = vpow2.f32 %v1028_v59  ;;  %v841_v3 = vsub.f32 0.0, %v716_v61 }
 0x11b   :  { %v1881_v4 = vpop.eup %1880  ;;  %1900 = vrcp.f32 %v1207_v63  ;;  %v1208_v5 = vadd.f32 1.0, %v1879_v2  ;;  %v842_v6 = vsub.f32 0.0, %v717_v0  ;;  %v479_v7 = vpop.xlane.xlu0 %478 }
 0x11c   :  { %v482_v8 = vpop.xlane.xlu1 %481  ;;  %v1883_v9 = vpop.eup %1882  ;;  %v1209_v10 = vadd.f32 1.0, %v1881_v4  ;;  %1902 = vpow2.f32 %v1030_v60  ;;  %v1032_v11 = vmul.f32 1.442695, %v841_v3  ;;  %v718_v12 = vadd.f32 %v2559_v34, %v479_v7 }
 0x11d   :  { %v1885_v22 = vpop.eup %1884  ;;  %1904 = vrcp.f32 %v1208_v5  ;;  %v1210_v13 = vadd.f32 1.0, %v1883_v9  ;;  %v1034_v14 = vmul.f32 1.442695, %v842_v6  ;;  %v719_v1 = vadd.f32 %v2559_v34, %v482_v8 }
 0x11e   :  { %v1887_v15 = vpop.eup %1886  ;;  %1579 = vst.msk [vmem:[%s3445_s3 + $0x1a8] sm:$0xff] %vm1525_vm1, %v1885_v22  ;;  %1906 = vrcp.f32 %v1209_v10  ;;  %v843_v16 = vsub.f32 0.0, %v718_v12 }
 0x11f   :  { %v1889_v17 = vpop.eup %1888  ;;  %1580 = vst.msk [vmem:[%s3445_s3 + $0x1b0] sm:$0xff] %vm1525_vm1, %v1887_v15  ;;  %1908 = vrcp.f32 %v1210_v13  ;;  %v844_v18 = vsub.f32 0.0, %v719_v1  ;;  %v485_v19 = vpop.xlane.xlu0 %484 }
 0x120   :  { %v488_v20 = vpop.xlane.xlu1 %487  ;;  %v1891_v21 = vpop.eup %1890  ;;  %v1211_v23 = vadd.f32 1.0, %v1889_v17  ;;  %1910 = vpow2.f32 %v1032_v11  ;;  %v1036_v24 = vmul.f32 1.442695, %v843_v16  ;;  %v720_v25 = vadd.f32 %v2559_v34, %v485_v19 }
 0x121   :  { %v1893_v26 = vpop.eup %1892  ;;  %v1212_v27 = vadd.f32 1.0, %v1891_v21  ;;  %1912 = vpow2.f32 %v1034_v14  ;;  %v1038_v28 = vmul.f32 1.442695, %v844_v18  ;;  %v721_v29 = vadd.f32 %v2559_v34, %v488_v20 }
 0x122   :  { %v1895_v30 = vpop.eup %1894  ;;  %1581 = vst.msk [vmem:[%s3445_s3 + $0x1b8] sm:$0xff] %vm1525_vm1, %v1893_v26  ;;  %1914 = vrcp.f32 %v1211_v23  ;;  %v845_v31 = vsub.f32 0.0, %v720_v25 }
 0x123   :  { %v1897_v32 = vpop.eup %1896  ;;  %1582 = vst.msk [vmem:[%s3445_s3 + $0x1c0] sm:$0xff] %vm1525_vm1, %v1895_v30  ;;  %1916 = vrcp.f32 %v1212_v27  ;;  %v846_v33 = vsub.f32 0.0, %v721_v29  ;;  %v491_v35 = vpop.xlane.xlu0 %490 }
 0x124   :  { %v494_v36 = vpop.xlane.xlu1 %493  ;;  %v1899_v37 = vpop.eup %1898  ;;  %v1213_v38 = vadd.f32 1.0, %v1897_v32  ;;  %1918 = vpow2.f32 %v1036_v24  ;;  %v1040_v39 = vmul.f32 1.442695, %v845_v31  ;;  %v722_v40 = vadd.f32 %v2559_v34, %v491_v35 }
 0x125   :  { %v1901_v41 = vpop.eup %1900  ;;  %v1214_v42 = vadd.f32 1.0, %v1899_v37  ;;  %1920 = vpow2.f32 %v1038_v28  ;;  %v723_v43 = vadd.f32 %v2559_v34, %v494_v36  ;;  %v1042_v45 = vmul.f32 1.442695, %v846_v33 }
 0x126   :  { %v1903_v44 = vpop.eup %1902  ;;  %1583 = vst.msk [vmem:[%s3445_s3 + $0x1c8] sm:$0xff] %vm1525_vm1, %v1901_v41  ;;  %1922 = vrcp.f32 %v1213_v38  ;;  %v847_v46 = vsub.f32 0.0, %v722_v40 }
 0x127   :  { %v1905_v47 = vpop.eup %1904  ;;  %1924 = vrcp.f32 %v1214_v42  ;;  %v1215_v48 = vadd.f32 1.0, %v1903_v44  ;;  %v848_v49 = vsub.f32 0.0, %v723_v43  ;;  %v497_v50 = vpop.xlane.xlu0 %496 }
 0x128   :  { %v500_v51 = vpop.xlane.xlu1 %499  ;;  %v1907_v52 = vpop.eup %1906  ;;  %1584 = vst.msk [vmem:[%s3445_s3 + $0x1d0] sm:$0xff] %vm1525_vm1, %v1905_v47  ;;  %1926 = vpow2.f32 %v1040_v39  ;;  %v1044_v53 = vmul.f32 1.442695, %v847_v46  ;;  %v724_v54 = vadd.f32 %v2559_v34, %v497_v50 }
 0x129   :  { %v725_v55 = vadd.f32 %v2559_v34, %v500_v51  ;;  %v1909_v56 = vpop.eup %1908  ;;  %1585 = vst.msk [vmem:[%s3445_s3 + $0x1d8] sm:$0xff] %vm1525_vm1, %v1907_v52  ;;  %1928 = vrcp.f32 %v1215_v48  ;;  %v1046_v57 = vmul.f32 1.442695, %v848_v49 }
 0x12a   :  { %v1911_v58 = vpop.eup %1910  ;;  %1586 = vst.msk [vmem:[%s3445_s3 + $0x1e0] sm:$0xff] %vm1525_vm1, %v1909_v56  ;;  %1930 = vpow2.f32 %v1042_v45  ;;  %v849_v59 = vsub.f32 0.0, %v724_v54 }
 0x12b   :  { %v850_v60 = vsub.f32 0.0, %v725_v55  ;;  %v1913_v61 = vpop.eup %1912  ;;  %v1216_v62 = vadd.f32 1.0, %v1911_v58  ;;  %1932 = vpow2.f32 %v1044_v53  ;;  %v503_v63 = vpop.xlane.xlu0 %502 }
 0x12c   :  { %v506_v0 = vpop.xlane.xlu1 %505  ;;  %v1915_v2 = vpop.eup %1914  ;;  %v1217_v3 = vadd.f32 1.0, %v1913_v61  ;;  %1934 = vpow2.f32 %v1046_v57  ;;  %v1048_v4 = vmul.f32 1.442695, %v849_v59  ;;  %v726_v7 = vadd.f32 %v2559_v34, %v503_v63 }
 0x12d   :  { %v1050_v5 = vmul.f32 1.442695, %v850_v60  ;;  %v1917_v6 = vpop.eup %1916  ;;  %1587 = vst.msk [vmem:[%s3445_s3 + $0x1e8] sm:$0xff] %vm1525_vm1, %v1915_v2  ;;  %1936 = vrcp.f32 %v1216_v62  ;;  %v727_v8 = vadd.f32 %v2559_v34, %v506_v0 }
 0x12e   :  { %v1919_v9 = vpop.eup %1918  ;;  %1588 = vst.msk [vmem:[%s3445_s3 + $0x1f0] sm:$0xff] %vm1525_vm1, %v1917_v6  ;;  %1938 = vrcp.f32 %v1217_v3  ;;  %v851_v12 = vsub.f32 0.0, %v726_v7 }
 0x12f   :  { %v1921_v10 = vpop.eup %1920  ;;  %v1218_v11 = vadd.f32 1.0, %v1919_v9  ;;  %1940 = vpow2.f32 %v1048_v4  ;;  %v852_v22 = vsub.f32 0.0, %v727_v8  ;;  %v509_v13 = vpop.xlane.xlu0 %508 }
 0x130   :  { %v512_v14 = vpop.xlane.xlu1 %511  ;;  %v1923_v1 = vpop.eup %1922  ;;  %v1219_v15 = vadd.f32 1.0, %v1921_v10  ;;  %1942 = vpow2.f32 %v1050_v5  ;;  %v728_v16 = vadd.f32 %v2559_v34, %v509_v13  ;;  %v1052_v19 = vmul.f32 1.442695, %v851_v12 }
 0x131   :  { %v729_v17 = vadd.f32 %v2559_v34, %v512_v14  ;;  %v1925_v18 = vpop.eup %1924  ;;  %1589 = vst.msk [vmem:[%s3445_s3 + $0x1f8] sm:$0xff] %vm1525_vm1, %v1923_v1  ;;  %1944 = vrcp.f32 %v1218_v11  ;;  %v1054_v20 = vmul.f32 1.442695, %v852_v22 }
 0x132   :  { %v1927_v21 = vpop.eup %1926  ;;  %1590 = vst.msk [vmem:[%s3445_s3 + $0x200] sm:$0xff] %vm1525_vm1, %v1925_v18  ;;  %1946 = vrcp.f32 %v1219_v15  ;;  %v853_v23 = vsub.f32 0.0, %v728_v16 }
 0x133   :  { %v854_v24 = vsub.f32 0.0, %v729_v17  ;;  %v1929_v25 = vpop.eup %1928  ;;  %v1220_v26 = vadd.f32 1.0, %v1927_v21  ;;  %1948 = vpow2.f32 %v1052_v19  ;;  %v515_v27 = vpop.xlane.xlu0 %514 }
 0x134   :  { %v518_v28 = vpop.xlane.xlu1 %517  ;;  %v1931_v29 = vpop.eup %1930  ;;  %1591 = vst.msk [vmem:[%s3445_s3 + $0x208] sm:$0xff] %vm1525_vm1, %v1929_v25  ;;  %1950 = vpow2.f32 %v1054_v20  ;;  %v1056_v30 = vmul.f32 1.442695, %v853_v23  ;;  %v730_v31 = vadd.f32 %v2559_v34, %v515_v27 }
 0x135   :  { %v1933_v32 = vpop.eup %1932  ;;  %1952 = vrcp.f32 %v1220_v26  ;;  %v1221_v33 = vadd.f32 1.0, %v1931_v29  ;;  %v731_v35 = vadd.f32 %v2559_v34, %v518_v28  ;;  %v1058_v38 = vmul.f32 1.442695, %v854_v24 }
 0x136   :  { %v1935_v36 = vpop.eup %1934  ;;  %v1222_v37 = vadd.f32 1.0, %v1933_v32  ;;  %1954 = vpow2.f32 %v1056_v30  ;;  %v855_v39 = vsub.f32 0.0, %v730_v31 }
 0x137   :  { %v1937_v40 = vpop.eup %1936  ;;  %1956 = vrcp.f32 %v1221_v33  ;;  %v1223_v41 = vadd.f32 1.0, %v1935_v36  ;;  %v856_v42 = vsub.f32 0.0, %v731_v35  ;;  %v521_v43 = vpop.xlane.xlu0 %520 }
 0x138   :  { %v524_v44 = vpop.xlane.xlu1 %523  ;;  %v1939_v45 = vpop.eup %1938  ;;  %1592 = vst.msk [vmem:[%s3445_s3 + $0x210] sm:$0xff] %vm1525_vm1, %v1937_v40  ;;  %1958 = vrcp.f32 %v1222_v37  ;;  %v1060_v46 = vmul.f32 1.442695, %v855_v39  ;;  %v732_v47 = vadd.f32 %v2559_v34, %v521_v43 }
 0x139   :  { %v733_v48 = vadd.f32 %v2559_v34, %v524_v44  ;;  %v1941_v49 = vpop.eup %1940  ;;  %1593 = vst.msk [vmem:[%s3445_s3 + $0x218] sm:$0xff] %vm1525_vm1, %v1939_v45  ;;  %1960 = vrcp.f32 %v1223_v41  ;;  %v1062_v50 = vmul.f32 1.442695, %v856_v42 }
 0x13a   :  { %v1943_v51 = vpop.eup %1942  ;;  %v1224_v52 = vadd.f32 1.0, %v1941_v49  ;;  %1962 = vpow2.f32 %v1058_v38  ;;  %v857_v53 = vsub.f32 0.0, %v732_v47 }
 0x13b   :  { %v858_v54 = vsub.f32 0.0, %v733_v48  ;;  %v1945_v55 = vpop.eup %1944  ;;  %v1225_v56 = vadd.f32 1.0, %v1943_v51  ;;  %1964 = vpow2.f32 %v1060_v46  ;;  %v527_v57 = vpop.xlane.xlu0 %526 }
 0x13c   :  { %v530_v58 = vpop.xlane.xlu1 %529  ;;  %v1947_v59 = vpop.eup %1946  ;;  %1594 = vst.msk [vmem:[%s3445_s3 + $0x220] sm:$0xff] %vm1525_vm1, %v1945_v55  ;;  %1966 = vrcp.f32 %v1224_v52  ;;  %v1064_v60 = vmul.f32 1.442695, %v857_v53  ;;  %v734_v61 = vadd.f32 %v2559_v34, %v527_v57 }
 0x13d   :  { %v1949_v62 = vpop.eup %1948  ;;  %1595 = vst.msk [vmem:[%s3445_s3 + $0x228] sm:$0xff] %vm1525_vm1, %v1947_v59  ;;  %1968 = vrcp.f32 %v1225_v56  ;;  %v735_v63 = vadd.f32 %v2559_v34, %v530_v58  ;;  %v1066_v3 = vmul.f32 1.442695, %v858_v54 }
 0x13e   :  { %v1951_v0 = vpop.eup %1950  ;;  %v1226_v2 = vadd.f32 1.0, %v1949_v62  ;;  %1970 = vpow2.f32 %v1062_v50  ;;  %v859_v4 = vsub.f32 0.0, %v734_v61 }
 0x13f   :  { %v1953_v5 = vpop.eup %1952  ;;  %v1227_v6 = vadd.f32 1.0, %v1951_v0  ;;  %1972 = vpow2.f32 %v1064_v60  ;;  %v860_v7 = vsub.f32 0.0, %v735_v63  ;;  %v533_v8 = vpop.xlane.xlu0 %532 }
 0x140   :  { %v536_v9 = vpop.xlane.xlu1 %535  ;;  %v1955_v10 = vpop.eup %1954  ;;  %1596 = vst.msk [vmem:[%s3445_s3 + $0x230] sm:$0xff] %vm1525_vm1, %v1953_v5  ;;  %1974 = vrcp.f32 %v1226_v2  ;;  %v1068_v11 = vmul.f32 1.442695, %v859_v4  ;;  %v736_v12 = vadd.f32 %v2559_v34, %v533_v8 }
 0x141   :  { %v737_v22 = vadd.f32 %v2559_v34, %v536_v9  ;;  %v1957_v13 = vpop.eup %1956  ;;  %1976 = vrcp.f32 %v1227_v6  ;;  %v1228_v14 = vadd.f32 1.0, %v1955_v10  ;;  %v1070_v1 = vmul.f32 1.442695, %v860_v7 }
 0x142   :  { %v1959_v15 = vpop.eup %1958  ;;  %1597 = vst.msk [vmem:[%s3445_s3 + $0x238] sm:$0xff] %vm1525_vm1, %v1957_v13  ;;  %1978 = vpow2.f32 %v1066_v3  ;;  %v861_v16 = vsub.f32 0.0, %v736_v12 }
 0x143   :  { %v862_v17 = vsub.f32 0.0, %v737_v22  ;;  %v1961_v18 = vpop.eup %1960  ;;  %1598 = vst.msk [vmem:[%s3445_s3 + $0x240] sm:$0xff] %vm1525_vm1, %v1959_v15  ;;  %1980 = vrcp.f32 %v1228_v14  ;;  %v539_v19 = vpop.xlane.xlu0 %538 }
 0x144   :  { %v542_v20 = vpop.xlane.xlu1 %541  ;;  %v1963_v21 = vpop.eup %1962  ;;  %1599 = vst.msk [vmem:[%s3445_s3 + $0x248] sm:$0xff] %vm1525_vm1, %v1961_v18  ;;  %1982 = vpow2.f32 %v1068_v11  ;;  %v1072_v23 = vmul.f32 1.442695, %v861_v16  ;;  %v738_v24 = vadd.f32 %v2559_v34, %v539_v19 }
 0x145   :  { %v1965_v25 = vpop.eup %1964  ;;  %v1229_v26 = vadd.f32 1.0, %v1963_v21  ;;  %1984 = vpow2.f32 %v1070_v1  ;;  %v1074_v27 = vmul.f32 1.442695, %v862_v17  ;;  %v739_v28 = vadd.f32 %v2559_v34, %v542_v20 }
 0x146   :  { %v1967_v29 = vpop.eup %1966  ;;  %v1230_v30 = vadd.f32 1.0, %v1965_v25  ;;  %1986 = vpow2.f32 %v1072_v23  ;;  %v863_v31 = vsub.f32 0.0, %v738_v24 }
 0x147   :  { %v1969_v32 = vpop.eup %1968  ;;  %1600 = vst.msk [vmem:[%s3445_s3 + $0x250] sm:$0xff] %vm1525_vm1, %v1967_v29  ;;  %1988 = vrcp.f32 %v1229_v26  ;;  %v864_v33 = vsub.f32 0.0, %v739_v28  ;;  %v545_v35 = vpop.xlane.xlu0 %544 }
 0x148   :  { %v548_v36 = vpop.xlane.xlu1 %547  ;;  %v1971_v37 = vpop.eup %1970  ;;  %1601 = vst.msk [vmem:[%s3445_s3 + $0x258] sm:$0xff] %vm1525_vm1, %v1969_v32  ;;  %1990 = vrcp.f32 %v1230_v30  ;;  %v1076_v38 = vmul.f32 1.442695, %v863_v31  ;;  %v740_v39 = vadd.f32 %v2559_v34, %v545_v35 }
 0x149   :  { %v741_v40 = vadd.f32 %v2559_v34, %v548_v36  ;;  %v1973_v41 = vpop.eup %1972  ;;  %v1231_v42 = vadd.f32 1.0, %v1971_v37  ;;  %1992 = vpow2.f32 %v1074_v27  ;;  %v1078_v43 = vmul.f32 1.442695, %v864_v33 }
 0x14a   :  { %v1975_v44 = vpop.eup %1974  ;;  %v1232_v45 = vadd.f32 1.0, %v1973_v41  ;;  %1994 = vpow2.f32 %v1076_v38  ;;  %v865_v46 = vsub.f32 0.0, %v740_v39 }
 0x14b   :  { %v866_v47 = vsub.f32 0.0, %v741_v40  ;;  %v1977_v48 = vpop.eup %1976  ;;  %1602 = vst.msk [vmem:[%s3445_s3 + $0x260] sm:$0xff] %vm1525_vm1, %v1975_v44  ;;  %1996 = vrcp.f32 %v1231_v42  ;;  %v551_v49 = vpop.xlane.xlu0 %550 }
 0x14c   :  { %v554_v50 = vpop.xlane.xlu1 %553  ;;  %v1979_v51 = vpop.eup %1978  ;;  %1603 = vst.msk [vmem:[%s3445_s3 + $0x268] sm:$0xff] %vm1525_vm1, %v1977_v48  ;;  %1998 = vrcp.f32 %v1232_v45  ;;  %v1080_v52 = vmul.f32 1.442695, %v865_v46  ;;  %v742_v54 = vadd.f32 %v2559_v34, %v551_v49 }
 0x14d   :  { %v1082_v53 = vmul.f32 1.442695, %v866_v47  ;;  %v1981_v55 = vpop.eup %1980  ;;  %v1233_v56 = vadd.f32 1.0, %v1979_v51  ;;  %2000 = vpow2.f32 %v1078_v43  ;;  %v743_v57 = vadd.f32 %v2559_v34, %v554_v50 }
 0x14e   :  { %v1983_v58 = vpop.eup %1982  ;;  %1604 = vst.msk [vmem:[%s3445_s3 + $0x270] sm:$0xff] %vm1525_vm1, %v1981_v55  ;;  %2002 = vpow2.f32 %v1080_v52  ;;  %v867_v59 = vsub.f32 0.0, %v742_v54 }
 0x14f   :  { %v1985_v60 = vpop.eup %1984  ;;  %2004 = vrcp.f32 %v1233_v56  ;;  %v1234_v61 = vadd.f32 1.0, %v1983_v58  ;;  %v868_v62 = vsub.f32 0.0, %v743_v57  ;;  %v557_v63 = vpop.xlane.xlu0 %556 }
 0x150   :  { %v560_v0 = vpop.xlane.xlu1 %559  ;;  %v1987_v2 = vpop.eup %1986  ;;  %v1235_v3 = vadd.f32 1.0, %v1985_v60  ;;  %2006 = vpow2.f32 %v1082_v53  ;;  %v1084_v4 = vmul.f32 1.442695, %v867_v59  ;;  %v744_v5 = vadd.f32 %v2559_v34, %v557_v63 }
 0x151   :  { %v1989_v6 = vpop.eup %1988  ;;  %2008 = vrcp.f32 %v1234_v61  ;;  %v1236_v7 = vadd.f32 1.0, %v1987_v2  ;;  %v1086_v8 = vmul.f32 1.442695, %v868_v62  ;;  %v745_v9 = vadd.f32 %v2559_v34, %v560_v0 }
 0x152   :  { %v1991_v10 = vpop.eup %1990  ;;  %1605 = vst.msk [vmem:[%s3445_s3 + $0x278] sm:$0xff] %vm1525_vm1, %v1989_v6  ;;  %2010 = vrcp.f32 %v1235_v3  ;;  %v869_v11 = vsub.f32 0.0, %v744_v5 }
 0x153   :  { %v1993_v12 = vpop.eup %1992  ;;  %1606 = vst.msk [vmem:[%s3445_s3 + $0x280] sm:$0xff] %vm1525_vm1, %v1991_v10  ;;  %2012 = vrcp.f32 %v1236_v7  ;;  %v870_v22 = vsub.f32 0.0, %v745_v9  ;;  %v563_v13 = vpop.xlane.xlu0 %562 }
 0x154   :  { %v566_v14 = vpop.xlane.xlu1 %565  ;;  %v1995_v1 = vpop.eup %1994  ;;  %v1237_v15 = vadd.f32 1.0, %v1993_v12  ;;  %2014 = vpow2.f32 %v1084_v4  ;;  %v1088_v16 = vmul.f32 1.442695, %v869_v11  ;;  %v746_v17 = vadd.f32 %v2559_v34, %v563_v13 }
 0x155   :  { %v1997_v18 = vpop.eup %1996  ;;  %v1238_v19 = vadd.f32 1.0, %v1995_v1  ;;  %2016 = vpow2.f32 %v1086_v8  ;;  %v1090_v20 = vmul.f32 1.442695, %v870_v22  ;;  %v747_v21 = vadd.f32 %v2559_v34, %v566_v14 }
 0x156   :  { %v1999_v23 = vpop.eup %1998  ;;  %1607 = vst.msk [vmem:[%s3445_s3 + $0x288] sm:$0xff] %vm1525_vm1, %v1997_v18  ;;  %2018 = vrcp.f32 %v1237_v15  ;;  %v871_v24 = vsub.f32 0.0, %v746_v17 }
 0x157   :  { %v2001_v25 = vpop.eup %2000  ;;  %1608 = vst.msk [vmem:[%s3445_s3 + $0x290] sm:$0xff] %vm1525_vm1, %v1999_v23  ;;  %2020 = vrcp.f32 %v1238_v19  ;;  %v872_v26 = vsub.f32 0.0, %v747_v21  ;;  %v569_v27 = vpop.xlane.xlu0 %568 }
 0x158   :  { %v572_v28 = vpop.xlane.xlu1 %571  ;;  %v2003_v29 = vpop.eup %2002  ;;  %v1239_v30 = vadd.f32 1.0, %v2001_v25  ;;  %2022 = vpow2.f32 %v1088_v16  ;;  %v1092_v31 = vmul.f32 1.442695, %v871_v24  ;;  %v748_v32 = vadd.f32 %v2559_v34, %v569_v27 }
 0x159   :  { %v2005_v33 = vpop.eup %2004  ;;  %v1240_v35 = vadd.f32 1.0, %v2003_v29  ;;  %2024 = vpow2.f32 %v1090_v20  ;;  %v749_v36 = vadd.f32 %v2559_v34, %v572_v28  ;;  %v1094_v38 = vmul.f32 1.442695, %v872_v26 }
 0x15a   :  { %v2007_v37 = vpop.eup %2006  ;;  %1609 = vst.msk [vmem:[%s3445_s3 + $0x298] sm:$0xff] %vm1525_vm1, %v2005_v33  ;;  %2026 = vrcp.f32 %v1239_v30  ;;  %v873_v39 = vsub.f32 0.0, %v748_v32 }
 0x15b   :  { %v2009_v40 = vpop.eup %2008  ;;  %2028 = vrcp.f32 %v1240_v35  ;;  %v1241_v41 = vadd.f32 1.0, %v2007_v37  ;;  %v874_v42 = vsub.f32 0.0, %v749_v36  ;;  %v575_v43 = vpop.xlane.xlu0 %574 }
 0x15c   :  { %v578_v44 = vpop.xlane.xlu1 %577  ;;  %v2011_v45 = vpop.eup %2010  ;;  %1610 = vst.msk [vmem:[%s3445_s3 + $0x2a0] sm:$0xff] %vm1525_vm1, %v2009_v40  ;;  %2030 = vpow2.f32 %v1092_v31  ;;  %v1096_v46 = vmul.f32 1.442695, %v873_v39  ;;  %v750_v47 = vadd.f32 %v2559_v34, %v575_v43 }
 0x15d   :  { %v751_v48 = vadd.f32 %v2559_v34, %v578_v44  ;;  %v2013_v49 = vpop.eup %2012  ;;  %1611 = vst.msk [vmem:[%s3445_s3 + $0x2a8] sm:$0xff] %vm1525_vm1, %v2011_v45  ;;  %2032 = vrcp.f32 %v1241_v41  ;;  %v1098_v50 = vmul.f32 1.442695, %v874_v42 }
 0x15e   :  { %v2015_v51 = vpop.eup %2014  ;;  %1612 = vst.msk [vmem:[%s3445_s3 + $0x2b0] sm:$0xff] %vm1525_vm1, %v2013_v49  ;;  %2034 = vpow2.f32 %v1094_v38  ;;  %v875_v52 = vsub.f32 0.0, %v750_v47 }
 0x15f   :  { %v876_v53 = vsub.f32 0.0, %v751_v48  ;;  %v2017_v54 = vpop.eup %2016  ;;  %v1242_v55 = vadd.f32 1.0, %v2015_v51  ;;  %2036 = vpow2.f32 %v1096_v46  ;;  %v581_v56 = vpop.xlane.xlu0 %580 }
 0x160   :  { %v584_v57 = vpop.xlane.xlu1 %583  ;;  %v2019_v58 = vpop.eup %2018  ;;  %v1243_v59 = vadd.f32 1.0, %v2017_v54  ;;  %2038 = vpow2.f32 %v1098_v50  ;;  %v1100_v60 = vmul.f32 1.442695, %v875_v52  ;;  %v752_v63 = vadd.f32 %v2559_v34, %v581_v56 }
 0x161   :  { %v1102_v61 = vmul.f32 1.442695, %v876_v53  ;;  %v2021_v62 = vpop.eup %2020  ;;  %1613 = vst.msk [vmem:[%s3445_s3 + $0x2b8] sm:$0xff] %vm1525_vm1, %v2019_v58  ;;  %2040 = vrcp.f32 %v1242_v55  ;;  %v753_v0 = vadd.f32 %v2559_v34, %v584_v57 }
 0x162   :  { %v2023_v2 = vpop.eup %2022  ;;  %1614 = vst.msk [vmem:[%s3445_s3 + $0x2c0] sm:$0xff] %vm1525_vm1, %v2021_v62  ;;  %2042 = vrcp.f32 %v1243_v59  ;;  %v877_v5 = vsub.f32 0.0, %v752_v63 }
 0x163   :  { %v2025_v3 = vpop.eup %2024  ;;  %v1244_v4 = vadd.f32 1.0, %v2023_v2  ;;  %2044 = vpow2.f32 %v1100_v60  ;;  %v878_v6 = vsub.f32 0.0, %v753_v0  ;;  %v587_v7 = vpop.xlane.xlu0 %586 }
 0x164   :  { %v590_v8 = vpop.xlane.xlu1 %589  ;;  %v2027_v9 = vpop.eup %2026  ;;  %v1245_v10 = vadd.f32 1.0, %v2025_v3  ;;  %2046 = vpow2.f32 %v1102_v61  ;;  %v754_v11 = vadd.f32 %v2559_v34, %v587_v7  ;;  %v1104_v13 = vmul.f32 1.442695, %v877_v5 }
 0x165   :  { %v755_v12 = vadd.f32 %v2559_v34, %v590_v8  ;;  %v2029_v22 = vpop.eup %2028  ;;  %1615 = vst.msk [vmem:[%s3445_s3 + $0x2c8] sm:$0xff] %vm1525_vm1, %v2027_v9  ;;  %2048 = vrcp.f32 %v1244_v4  ;;  %v1106_v14 = vmul.f32 1.442695, %v878_v6 }
 0x166   :  { %v2031_v1 = vpop.eup %2030  ;;  %1616 = vst.msk [vmem:[%s3445_s3 + $0x2d0] sm:$0xff] %vm1525_vm1, %v2029_v22  ;;  %2050 = vrcp.f32 %v1245_v10  ;;  %v879_v15 = vsub.f32 0.0, %v754_v11 }
 0x167   :  { %v880_v16 = vsub.f32 0.0, %v755_v12  ;;  %v2033_v17 = vpop.eup %2032  ;;  %v1246_v18 = vadd.f32 1.0, %v2031_v1  ;;  %2052 = vpow2.f32 %v1104_v13  ;;  %v593_v19 = vpop.xlane.xlu0 %592 }
 0x168   :  { %v596_v20 = vpop.xlane.xlu1 %595  ;;  %v2035_v21 = vpop.eup %2034  ;;  %1617 = vst.msk [vmem:[%s3445_s3 + $0x2d8] sm:$0xff] %vm1525_vm1, %v2033_v17  ;;  %2054 = vpow2.f32 %v1106_v14  ;;  %v1108_v23 = vmul.f32 1.442695, %v879_v15  ;;  %v756_v24 = vadd.f32 %v2559_v34, %v593_v19 }
 0x169   :  { %v2037_v25 = vpop.eup %2036  ;;  %2056 = vrcp.f32 %v1246_v18  ;;  %v1247_v26 = vadd.f32 1.0, %v2035_v21  ;;  %v757_v27 = vadd.f32 %v2559_v34, %v596_v20  ;;  %v1110_v30 = vmul.f32 1.442695, %v880_v16 }
 0x16a   :  { %v2039_v28 = vpop.eup %2038  ;;  %v1248_v29 = vadd.f32 1.0, %v2037_v25  ;;  %2058 = vpow2.f32 %v1108_v23  ;;  %v881_v31 = vsub.f32 0.0, %v756_v24 }
 0x16b   :  { %v2041_v32 = vpop.eup %2040  ;;  %2060 = vrcp.f32 %v1247_v26  ;;  %v1249_v33 = vadd.f32 1.0, %v2039_v28  ;;  %v882_v35 = vsub.f32 0.0, %v757_v27  ;;  %v599_v36 = vpop.xlane.xlu0 %598 }
 0x16c   :  { %v602_v37 = vpop.xlane.xlu1 %601  ;;  %v2043_v38 = vpop.eup %2042  ;;  %1618 = vst.msk [vmem:[%s3445_s3 + $0x2e0] sm:$0xff] %vm1525_vm1, %v2041_v32  ;;  %2062 = vrcp.f32 %v1248_v29  ;;  %v1112_v39 = vmul.f32 1.442695, %v881_v31  ;;  %v758_v40 = vadd.f32 %v2559_v34, %v599_v36 }
 0x16d   :  { %v759_v41 = vadd.f32 %v2559_v34, %v602_v37  ;;  %v2045_v42 = vpop.eup %2044  ;;  %1619 = vst.msk [vmem:[%s3445_s3 + $0x2e8] sm:$0xff] %vm1525_vm1, %v2043_v38  ;;  %2064 = vrcp.f32 %v1249_v33  ;;  %v1114_v43 = vmul.f32 1.442695, %v882_v35 }
 0x16e   :  { %v2047_v44 = vpop.eup %2046  ;;  %v1250_v45 = vadd.f32 1.0, %v2045_v42  ;;  %2066 = vpow2.f32 %v1110_v30  ;;  %v883_v46 = vsub.f32 0.0, %v758_v40 }
 0x16f   :  { %v884_v47 = vsub.f32 0.0, %v759_v41  ;;  %v2049_v48 = vpop.eup %2048  ;;  %v1251_v49 = vadd.f32 1.0, %v2047_v44  ;;  %2068 = vpow2.f32 %v1112_v39  ;;  %v605_v50 = vpop.xlane.xlu0 %604 }
 0x170   :  { %v608_v51 = vpop.xlane.xlu1 %607  ;;  %v2051_v52 = vpop.eup %2050  ;;  %1620 = vst.msk [vmem:[%s3445_s3 + $0x2f0] sm:$0xff] %vm1525_vm1, %v2049_v48  ;;  %2070 = vrcp.f32 %v1250_v45  ;;  %v1116_v53 = vmul.f32 1.442695, %v883_v46  ;;  %v760_v54 = vadd.f32 %v2559_v34, %v605_v50 }
 0x171   :  { %v2053_v55 = vpop.eup %2052  ;;  %1621 = vst.msk [vmem:[%s3445_s3 + $0x2f8] sm:$0xff] %vm1525_vm1, %v2051_v52  ;;  %2072 = vrcp.f32 %v1251_v49  ;;  %v761_v56 = vadd.f32 %v2559_v34, %v608_v51  ;;  %v1118_v59 = vmul.f32 1.442695, %v884_v47 }
 0x172   :  { %v2055_v57 = vpop.eup %2054  ;;  %v1252_v58 = vadd.f32 1.0, %v2053_v55  ;;  %2074 = vpow2.f32 %v1114_v43  ;;  %v885_v60 = vsub.f32 0.0, %v760_v54 }
 0x173   :  { %v2057_v61 = vpop.eup %2056  ;;  %v1253_v62 = vadd.f32 1.0, %v2055_v57  ;;  %2076 = vpow2.f32 %v1116_v53  ;;  %v886_v63 = vsub.f32 0.0, %v761_v56  ;;  %v611_v0 = vpop.xlane.xlu0 %610 }
 0x174   :  { %v614_v2 = vpop.xlane.xlu1 %613  ;;  %v2059_v3 = vpop.eup %2058  ;;  %1622 = vst.msk [vmem:[%s3445_s3 + $0x300] sm:$0xff] %vm1525_vm1, %v2057_v61  ;;  %2078 = vrcp.f32 %v1252_v58  ;;  %v1120_v4 = vmul.f32 1.442695, %v885_v60  ;;  %v762_v5 = vadd.f32 %v2559_v34, %v611_v0 }
 0x175   :  { %v763_v6 = vadd.f32 %v2559_v34, %v614_v2  ;;  %v2061_v7 = vpop.eup %2060  ;;  %2080 = vrcp.f32 %v1253_v62  ;;  %v1254_v8 = vadd.f32 1.0, %v2059_v3  ;;  %v1122_v9 = vmul.f32 1.442695, %v886_v63 }
 0x176   :  { %v2063_v10 = vpop.eup %2062  ;;  %1623 = vst.msk [vmem:[%s3445_s3 + $0x308] sm:$0xff] %vm1525_vm1, %v2061_v7  ;;  %2082 = vpow2.f32 %v1118_v59  ;;  %v887_v11 = vsub.f32 0.0, %v762_v5 }
 0x177   :  { %v888_v12 = vsub.f32 0.0, %v763_v6  ;;  %v2065_v22 = vpop.eup %2064  ;;  %1624 = vst.msk [vmem:[%s3445_s3 + $0x310] sm:$0xff] %vm1525_vm1, %v2063_v10  ;;  %2084 = vrcp.f32 %v1254_v8  ;;  %v617_v13 = vpop.xlane.xlu0 %616 }
 0x178   :  { %v620_v14 = vpop.xlane.xlu1 %619  ;;  %v2067_v1 = vpop.eup %2066  ;;  %1625 = vst.msk [vmem:[%s3445_s3 + $0x318] sm:$0xff] %vm1525_vm1, %v2065_v22  ;;  %2086 = vpow2.f32 %v1120_v4  ;;  %v1124_v15 = vmul.f32 1.442695, %v887_v11  ;;  %v764_v16 = vadd.f32 %v2559_v34, %v617_v13 }
 0x179   :  { %v2069_v17 = vpop.eup %2068  ;;  %v1255_v18 = vadd.f32 1.0, %v2067_v1  ;;  %2088 = vpow2.f32 %v1122_v9  ;;  %v1126_v19 = vmul.f32 1.442695, %v888_v12  ;;  %v765_v20 = vadd.f32 %v2559_v34, %v620_v14 }
 0x17a   :  { %v2071_v21 = vpop.eup %2070  ;;  %v1256_v23 = vadd.f32 1.0, %v2069_v17  ;;  %2090 = vpow2.f32 %v1124_v15  ;;  %v889_v24 = vsub.f32 0.0, %v764_v16 }
 0x17b   :  { %v2073_v25 = vpop.eup %2072  ;;  %1626 = vst.msk [vmem:[%s3445_s3 + $0x320] sm:$0xff] %vm1525_vm1, %v2071_v21  ;;  %2092 = vrcp.f32 %v1255_v18  ;;  %v890_v26 = vsub.f32 0.0, %v765_v20  ;;  %v623_v27 = vpop.xlane.xlu0 %622 }
 0x17c   :  { %v626_v28 = vpop.xlane.xlu1 %625  ;;  %v2075_v29 = vpop.eup %2074  ;;  %1627 = vst.msk [vmem:[%s3445_s3 + $0x328] sm:$0xff] %vm1525_vm1, %v2073_v25  ;;  %2094 = vrcp.f32 %v1256_v23  ;;  %v1128_v30 = vmul.f32 1.442695, %v889_v24  ;;  %v766_v31 = vadd.f32 %v2559_v34, %v623_v27 }
 0x17d   :  { %v767_v32 = vadd.f32 %v2559_v34, %v626_v28  ;;  %v2077_v33 = vpop.eup %2076  ;;  %v1257_v35 = vadd.f32 1.0, %v2075_v29  ;;  %2096 = vpow2.f32 %v1126_v19  ;;  %v1130_v36 = vmul.f32 1.442695, %v890_v26 }
 0x17e   :  { %v2079_v37 = vpop.eup %2078  ;;  %v1258_v38 = vadd.f32 1.0, %v2077_v33  ;;  %2098 = vpow2.f32 %v1128_v30  ;;  %v891_v39 = vsub.f32 0.0, %v766_v31 }
 0x17f   :  { %v892_v40 = vsub.f32 0.0, %v767_v32  ;;  %v2081_v41 = vpop.eup %2080  ;;  %1628 = vst.msk [vmem:[%s3445_s3 + $0x330] sm:$0xff] %vm1525_vm1, %v2079_v37  ;;  %2100 = vrcp.f32 %v1257_v35  ;;  %v629_v42 = vpop.xlane.xlu0 %628 }
 0x180   :  { %v632_v43 = vpop.xlane.xlu1 %631  ;;  %v2083_v44 = vpop.eup %2082  ;;  %1629 = vst.msk [vmem:[%s3445_s3 + $0x338] sm:$0xff] %vm1525_vm1, %v2081_v41  ;;  %2102 = vrcp.f32 %v1258_v38  ;;  %v1132_v45 = vmul.f32 1.442695, %v891_v39  ;;  %v768_v47 = vadd.f32 %v2559_v34, %v629_v42 }
 0x181   :  { %v1134_v46 = vmul.f32 1.442695, %v892_v40  ;;  %v2085_v48 = vpop.eup %2084  ;;  %v1259_v49 = vadd.f32 1.0, %v2083_v44  ;;  %2104 = vpow2.f32 %v1130_v36  ;;  %v769_v50 = vadd.f32 %v2559_v34, %v632_v43 }
 0x182   :  { %v2087_v51 = vpop.eup %2086  ;;  %1630 = vst.msk [vmem:[%s3445_s3 + $0x340] sm:$0xff] %vm1525_vm1, %v2085_v48  ;;  %2106 = vpow2.f32 %v1132_v45  ;;  %v893_v52 = vsub.f32 0.0, %v768_v47 }
 0x183   :  { %v2089_v53 = vpop.eup %2088  ;;  %2108 = vrcp.f32 %v1259_v49  ;;  %v1260_v54 = vadd.f32 1.0, %v2087_v51  ;;  %v894_v55 = vsub.f32 0.0, %v769_v50  ;;  %v635_v56 = vpop.xlane.xlu0 %634 }
 0x184   :  { %v638_v57 = vpop.xlane.xlu1 %637  ;;  %v2091_v58 = vpop.eup %2090  ;;  %v1261_v59 = vadd.f32 1.0, %v2089_v53  ;;  %2110 = vpow2.f32 %v1134_v46  ;;  %v1136_v60 = vmul.f32 1.442695, %v893_v52  ;;  %v770_v61 = vadd.f32 %v2559_v34, %v635_v56 }
 0x185   :  { %v2093_v62 = vpop.eup %2092  ;;  %2112 = vrcp.f32 %v1260_v54  ;;  %v1262_v63 = vadd.f32 1.0, %v2091_v58  ;;  %v1138_v0 = vmul.f32 1.442695, %v894_v55  ;;  %v771_v2 = vadd.f32 %v2559_v34, %v638_v57 }
 0x186   :  { %v2095_v3 = vpop.eup %2094  ;;  %1631 = vst.msk [vmem:[%s3445_s3 + $0x348] sm:$0xff] %vm1525_vm1, %v2093_v62  ;;  %2114 = vrcp.f32 %v1261_v59  ;;  %v895_v4 = vsub.f32 0.0, %v770_v61 }
 0x187   :  { %v2097_v5 = vpop.eup %2096  ;;  %1632 = vst.msk [vmem:[%s3445_s3 + $0x350] sm:$0xff] %vm1525_vm1, %v2095_v3  ;;  %2116 = vrcp.f32 %v1262_v63  ;;  %v896_v6 = vsub.f32 0.0, %v771_v2  ;;  %v641_v7 = vpop.xlane.xlu0 %640 }
 0x188   :  { %v644_v8 = vpop.xlane.xlu1 %643  ;;  %v2099_v9 = vpop.eup %2098  ;;  %v1263_v10 = vadd.f32 1.0, %v2097_v5  ;;  %2118 = vpow2.f32 %v1136_v60  ;;  %v1140_v11 = vmul.f32 1.442695, %v895_v4  ;;  %v772_v12 = vadd.f32 %v2559_v34, %v641_v7 }
 0x189   :  { %v2101_v22 = vpop.eup %2100  ;;  %v1264_v13 = vadd.f32 1.0, %v2099_v9  ;;  %2120 = vpow2.f32 %v1138_v0  ;;  %v1142_v14 = vmul.f32 1.442695, %v896_v6  ;;  %v773_v1 = vadd.f32 %v2559_v34, %v644_v8 }
 0x18a   :  { %v2103_v15 = vpop.eup %2102  ;;  %1633 = vst.msk [vmem:[%s3445_s3 + $0x358] sm:$0xff] %vm1525_vm1, %v2101_v22  ;;  %2122 = vrcp.f32 %v1263_v10  ;;  %v897_v16 = vsub.f32 0.0, %v772_v12 }
 0x18b   :  { %v2105_v17 = vpop.eup %2104  ;;  %1634 = vst.msk [vmem:[%s3445_s3 + $0x360] sm:$0xff] %vm1525_vm1, %v2103_v15  ;;  %2124 = vrcp.f32 %v1264_v13  ;;  %v898_v18 = vsub.f32 0.0, %v773_v1  ;;  %v647_v19 = vpop.xlane.xlu0 %646 }
 0x18c   :  { %v2107_v20 = vpop.eup %2106  ;;  %v1265_v21 = vadd.f32 1.0, %v2105_v17  ;;  %2126 = vpow2.f32 %v1140_v11  ;;  %v1144_v23 = vmul.f32 1.442695, %v897_v16  ;;  %v774_v24 = vadd.f32 %v2559_v34, %v647_v19 }
 0x18d   :  { %v2109_v25 = vpop.eup %2108  ;;  %v1266_v26 = vadd.f32 1.0, %v2107_v20  ;;  %2128 = vpow2.f32 %v1142_v14  ;;  %v1146_v28 = vmul.f32 1.442695, %v898_v18 }
 0x18e   :  { %v2111_v27 = vpop.eup %2110  ;;  %1635 = vst.msk [vmem:[%s3445_s3 + $0x368] sm:$0xff] %vm1525_vm1, %v2109_v25  ;;  %2130 = vrcp.f32 %v1265_v21  ;;  %v899_v29 = vsub.f32 0.0, %v774_v24 }
 0x18f   :  { %v2113_v30 = vpop.eup %2112  ;;  %2132 = vrcp.f32 %v1266_v26  ;;  %v1267_v31 = vadd.f32 1.0, %v2111_v27 }
 0x190   :  { %v2115_v32 = vpop.eup %2114  ;;  %1636 = vst.msk [vmem:[%s3445_s3 + $0x370] sm:$0xff] %vm1525_vm1, %v2113_v30  ;;  %2134 = vpow2.f32 %v1144_v23  ;;  %v1148_v34 = vmul.f32 1.442695, %v899_v29 }
 0x191   :  { %v2117_v33 = vpop.eup %2116  ;;  %1637 = vst.msk [vmem:[%s3445_s3 + $0x378] sm:$0xff] %vm1525_vm1, %v2115_v32  ;;  %2136 = vrcp.f32 %v1267_v31 }
 0x192   :  { %v2119_v35 = vpop.eup %2118  ;;  %1638 = vst.msk [vmem:[%s3445_s3 + $0x380] sm:$0xff] %vm1525_vm1, %v2117_v33  ;;  %2138 = vpow2.f32 %v1146_v28 }
 0x193   :  { %v2121_v36 = vpop.eup %2120  ;;  %v1268_v37 = vadd.f32 1.0, %v2119_v35  ;;  %2140 = vpow2.f32 %v1148_v34 }
 0x194   :  { %v2123_v38 = vpop.eup %2122  ;;  %v1269_v39 = vadd.f32 1.0, %v2121_v36 }
 0x195   :  { %v2125_v40 = vpop.eup %2124  ;;  %1639 = vst.msk [vmem:[%s3445_s3 + $0x388] sm:$0xff] %vm1525_vm1, %v2123_v38  ;;  %2142 = vrcp.f32 %v1268_v37 }
 0x196   :  { %v2127_v41 = vpop.eup %2126  ;;  %1640 = vst.msk [vmem:[%s3445_s3 + $0x390] sm:$0xff] %vm1525_vm1, %v2125_v40  ;;  %2144 = vrcp.f32 %v1269_v39 }
 0x197   :  { %v2129_v42 = vpop.eup %2128  ;;  %v1270_v43 = vadd.f32 1.0, %v2127_v41 }
 0x198   :  { %v2131_v44 = vpop.eup %2130  ;;  %v1271_v45 = vadd.f32 1.0, %v2129_v42 }
 0x199   :  { %v2133_v46 = vpop.eup %2132  ;;  %1641 = vst.msk [vmem:[%s3445_s3 + $0x398] sm:$0xff] %vm1525_vm1, %v2131_v44  ;;  %2146 = vrcp.f32 %v1270_v43 }
 0x19a   :  { %v2135_v47 = vpop.eup %2134  ;;  %1642 = vst.msk [vmem:[%s3445_s3 + $0x3a0] sm:$0xff] %vm1525_vm1, %v2133_v46  ;;  %2148 = vrcp.f32 %v1271_v45 }
 0x19b   :  { %v2137_v48 = vpop.eup %2136  ;;  %v1272_v49 = vadd.f32 1.0, %v2135_v47 }
 0x19c   :  { %v2139_v50 = vpop.eup %2138  ;;  %1643 = vst.msk [vmem:[%s3445_s3 + $0x3a8] sm:$0xff] %vm1525_vm1, %v2137_v48 }
 0x19d   :  { %v2141_v51 = vpop.eup %2140  ;;  %2150 = vrcp.f32 %v1272_v49  ;;  %v1273_v52 = vadd.f32 1.0, %v2139_v50 }
 0x19e   :  { %v1274_v53 = vadd.f32 1.0, %v2141_v51 }
 0x19f   :  { %v2143_v54 = vpop.eup %2142  ;;  %2152 = vrcp.f32 %v1273_v52 }
 0x1a0   :  { %v2145_v55 = vpop.eup %2144  ;;  %1644 = vst.msk [vmem:[%s3445_s3 + $0x3b0] sm:$0xff] %vm1525_vm1, %v2143_v54  ;;  %2154 = vrcp.f32 %v1274_v53 }
 0x1a1   :  { %1645 = vst.msk [vmem:[%s3445_s3 + $0x3b8] sm:$0xff] %vm1525_vm1, %v2145_v55 }
 0x1a3   :  { %v2147_v56 = vpop.eup %2146 }
 0x1a4   :  { %v2149_v57 = vpop.eup %2148  ;;  %1646 = vst.msk [vmem:[%s3445_s3 + $0x3c0] sm:$0xff] %vm1525_vm1, %v2147_v56 }
 0x1a5   :  { %1647 = vst.msk [vmem:[%s3445_s3 + $0x3c8] sm:$0xff] %vm1525_vm1, %v2149_v57 }
 0x1a7   :  { %v2151_v58 = vpop.eup %2150 }
 0x1a8   :  { %1648 = vst.msk [vmem:[%s3445_s3 + $0x3d0] sm:$0xff] %vm1525_vm1, %v2151_v58 }
 0x1a9   :  { %v2153_v59 = vpop.eup %2152 }
 0x1aa   :  { %v2155_v60 = vpop.eup %2154  ;;  %1649 = vst.msk [vmem:[%s3445_s3 + $0x3d8] sm:$0xff] %vm1525_vm1, %v2153_v59 }
 0x1ab   :  { %1650 = vst.msk [vmem:[%s3445_s3 + $0x3e0] sm:$0xff] %vm1525_vm1, %v2155_v60 }

</bundles_post_ra>
